<compile_context>
chip_gen: v5e
topology: v5e:2x2
jax: 0.10.0
libtpu: 0.0.40
codegen_flags: <defaults>
</compile_context>

<pallas_src>
import functools

import jax
import jax.numpy as jnp
from jax.experimental import pallas as pl
from jax.experimental.pallas import tpu as pltpu


def ae_kernel(out_dims, x_ref, *refs):
    """refs = [w0, ..., w11, bias_packed_ref, out_ref, latent_ref].

    Layers 0..5  = encoder (ReLU between, none after layer 5 -> latent)
    Layers 6..11 = decoder (ReLU between, Sigmoid after layer 11 -> output)
    """
    n_layers = len(out_dims)
    w_refs = refs[:n_layers]
    bias_ref = refs[n_layers]
    out_ref = refs[n_layers + 1]
    latent_ref = refs[n_layers + 2]

    # Static per-layer offsets into the packed bias row.
    offsets = []
    off = 0
    for d in out_dims:
        offsets.append(off)
        off += d

    h = x_ref[...]  # (TB, in_dim) f32

    for i in range(n_layers):
        w = w_refs[i][...]                                        # (in, out) bf16
        b = bias_ref[:, offsets[i]:offsets[i] + out_dims[i]]      # (1, out) f32
        # bf16 x bf16 MXU matmul with f32 accumulation; bias/activation in f32.
        h = jnp.dot(h.astype(jnp.bfloat16), w,
                    preferred_element_type=jnp.float32) + b
        if i == n_layers // 2 - 1:        # end of encoder -> latent (no act)
            latent_ref[...] = h
        elif i == n_layers - 1:           # end of decoder -> sigmoid output
            out_ref[...] = jax.nn.sigmoid(h)
        else:
            h = jnp.maximum(h, 0.0)       # ReLU


@functools.partial(jax.jit, static_argnums=(3, 4, 5))
def ae_forward(x, weights_bf16, bias_packed, out_dims, latent_dim, hw):
    batch = x.shape[0]

    # Batch tile: full MXU rows when batch is large; otherwise pad up to a
    # full f32 sublane multiple (8) so activation tiles are unmasked.
    if batch >= 256:
        tb = 256
    else:
        tb = max(8, ((batch + 7) // 8) * 8)
    padded = pl.cdiv(batch, tb) * tb
    if padded != batch:
        x = jnp.pad(x, ((0, padded - batch), (0, 0)))
    grid = (padded // tb,)

    kernel = functools.partial(ae_kernel, out_dims)

    in_specs = (
        [pl.BlockSpec((tb, hw), lambda i: (i, 0))]                         # x tile
        + [pl.BlockSpec(w.shape, lambda i: (0, 0)) for w in weights_bf16]  # resident
        + [pl.BlockSpec(bias_packed.shape, lambda i: (0, 0))]              # resident
    )
    out_specs = (
        pl.BlockSpec((tb, hw), lambda i: (i, 0)),
        pl.BlockSpec((tb, latent_dim), lambda i: (i, 0)),
    )

    out, latent = pl.pallas_call(
        kernel,
        out_shape=(
            jax.ShapeDtypeStruct((padded, hw), jnp.float32),
            jax.ShapeDtypeStruct((padded, latent_dim), jnp.float32),
        ),
        grid_spec=pltpu.PrefetchScalarGridSpec(
            num_scalar_prefetch=0,
            grid=grid,
            in_specs=in_specs,
            out_specs=out_specs,
        ),
        compiler_params=pltpu.CompilerParams(
            dimension_semantics=("parallel",)),
    )(x, *weights_bf16, bias_packed)

    # forward() does output.view(batch, H*W); drop the batch padding.
    return out[:batch], latent[:batch]


def make_params(key, dims):
    """PyTorch-default-style init: U(-1/sqrt(fan_in), 1/sqrt(fan_in)). f32."""
    ws, bs = [], []
    for i in range(len(dims) - 1):
        fan_in, fan_out = dims[i], dims[i + 1]
        key, kw, kb = jax.random.split(key, 3)
        bound = 1.0 / (fan_in ** 0.5)
        ws.append(jax.random.uniform(kw, (fan_in, fan_out), jnp.float32,
                                     -bound, bound))
        bs.append(jax.random.uniform(kb, (1, fan_out), jnp.float32,
                                     -bound, bound))
    return key, ws, bs


def reference_forward(x, ws, bs):
    """Pure-JAX f32 reference matching the PyTorch module."""
    h = x
    n = len(ws)
    latent = None
    for i in range(n):
        h = h @ ws[i] + bs[i]
        if i == n // 2 - 1:
            latent = h
        elif i == n - 1:
            h = jax.nn.sigmoid(h)
        else:
            h = jnp.maximum(h, 0.0)
    return h, latent


if __name__ == "__main__":
    # Small, module-consistent shapes: height=width=16 (input dim 256),
    # latent_dim=16, batch=2. (args.dropout / class_num unused in forward.)
    H = W = 16
    LATENT_DIM = 16
    BATCH = 2
    HW = H * W

    key = jax.random.PRNGKey(0)
    key, kx = jax.random.split(key)
    x = jax.random.uniform(kx, (BATCH, HW), jnp.float32)

    enc_dims = [HW, 512, 256, 128, 64, 32, LATENT_DIM]
    dec_dims = [LATENT_DIM, 32, 64, 128, 256, 512, HW]
    key, enc_w, enc_b = make_params(key, enc_dims)
    key, dec_w, dec_b = make_params(key, dec_dims)
    ws_f32 = enc_w + dec_w          # 12 weight matrices (in, out), f32
    bs_f32 = enc_b + dec_b          # 12 bias rows (1, out), f32

    out_dims = tuple(w.shape[1] for w in ws_f32)

    # bf16 weights for the MXU; biases packed into a single f32 row.
    weights_bf16 = [w.astype(jnp.bfloat16) for w in ws_f32]
    bias_packed = jnp.concatenate(bs_f32, axis=1)   # (1, sum(out_dims)) f32

    out, latent = ae_forward(x, weights_bf16, bias_packed,
                             out_dims, LATENT_DIM, HW)
    jax.block_until_ready((out, latent))

    # Shape / range checks.
    assert out.shape == (BATCH, HW), out.shape
    assert latent.shape == (BATCH, LATENT_DIM), latent.shape
    assert jnp.all((out >= 0.0) & (out <= 1.0))     # sigmoid output range

    # Numerical check against the f32 pure-JAX reference (bf16-weight tolerance).
    ref_out, ref_latent = reference_forward(x, ws_f32, bs_f32)
    assert float(jnp.max(jnp.abs(out - ref_out))) < 5e-2
    assert float(jnp.max(jnp.abs(latent - ref_latent))) < 5e-2

    print("KERNEL_OK")
</pallas_src>

<mosaic_0001>
module attributes {stable_mosaic.version = 11 : i64} {
  func.func @ae_kernel(%arg0: i32, %arg1: memref<8x256xf32, #tpu.memory_space<vmem>>, %arg2: memref<256x512xbf16, #tpu.memory_space<vmem>>, %arg3: memref<512x256xbf16, #tpu.memory_space<vmem>>, %arg4: memref<256x128xbf16, #tpu.memory_space<vmem>>, %arg5: memref<128x64xbf16, #tpu.memory_space<vmem>>, %arg6: memref<64x32xbf16, #tpu.memory_space<vmem>>, %arg7: memref<32x16xbf16, #tpu.memory_space<vmem>>, %arg8: memref<16x32xbf16, #tpu.memory_space<vmem>>, %arg9: memref<32x64xbf16, #tpu.memory_space<vmem>>, %arg10: memref<64x128xbf16, #tpu.memory_space<vmem>>, %arg11: memref<128x256xbf16, #tpu.memory_space<vmem>>, %arg12: memref<256x512xbf16, #tpu.memory_space<vmem>>, %arg13: memref<512x256xbf16, #tpu.memory_space<vmem>>, %arg14: memref<1x2256xf32, #tpu.memory_space<vmem>>, %arg15: memref<8x256xf32, #tpu.memory_space<vmem>>, %arg16: memref<8x16xf32, #tpu.memory_space<vmem>>) attributes {dimension_semantics = [#tpu.dimension_semantics<parallel>], iteration_bounds = array<i64: 1>, scalar_prefetch = 0 : i64, scratch_operands = 0 : i64, tpu.core_type = #tpu.core_type<tc>, window_params = [{transform_indices = @transform_0, window_bounds = array<i64: 8, 256>}, {pipeline_mode = #tpu.pipeline_mode<synchronous>, transform_indices = @transform_1, window_bounds = array<i64: 256, 512>}, {pipeline_mode = #tpu.pipeline_mode<synchronous>, transform_indices = @transform_2, window_bounds = array<i64: 512, 256>}, {pipeline_mode = #tpu.pipeline_mode<synchronous>, transform_indices = @transform_3, window_bounds = array<i64: 256, 128>}, {pipeline_mode = #tpu.pipeline_mode<synchronous>, transform_indices = @transform_4, window_bounds = array<i64: 128, 64>}, {pipeline_mode = #tpu.pipeline_mode<synchronous>, transform_indices = @transform_5, window_bounds = array<i64: 64, 32>}, {pipeline_mode = #tpu.pipeline_mode<synchronous>, transform_indices = @transform_6, window_bounds = array<i64: 32, 16>}, {pipeline_mode = #tpu.pipeline_mode<synchronous>, transform_indices = @transform_7, window_bounds = array<i64: 16, 32>}, {pipeline_mode = #tpu.pipeline_mode<synchronous>, transform_indices = @transform_8, window_bounds = array<i64: 32, 64>}, {pipeline_mode = #tpu.pipeline_mode<synchronous>, transform_indices = @transform_9, window_bounds = array<i64: 64, 128>}, {pipeline_mode = #tpu.pipeline_mode<synchronous>, transform_indices = @transform_10, window_bounds = array<i64: 128, 256>}, {pipeline_mode = #tpu.pipeline_mode<synchronous>, transform_indices = @transform_11, window_bounds = array<i64: 256, 512>}, {pipeline_mode = #tpu.pipeline_mode<synchronous>, transform_indices = @transform_12, window_bounds = array<i64: 512, 256>}, {pipeline_mode = #tpu.pipeline_mode<synchronous>, transform_indices = @transform_13, window_bounds = array<i64: 1, 2256>}, {transform_indices = @transform_14, window_bounds = array<i64: 8, 256>}, {transform_indices = @transform_15, window_bounds = array<i64: 8, 16>}]} {
    %c0 = arith.constant 0 : index
    %c0_0 = arith.constant 0 : index
    %0 = vector.load %arg1[%c0, %c0_0] : memref<8x256xf32, #tpu.memory_space<vmem>>, vector<8x256xf32>
    %c0_1 = arith.constant 0 : index
    %c0_2 = arith.constant 0 : index
    %1 = vector.load %arg2[%c0_1, %c0_2] : memref<256x512xbf16, #tpu.memory_space<vmem>>, vector<256x512xbf16>
    %c0_3 = arith.constant 0 : index
    %c0_4 = arith.constant 0 : index
    %2 = vector.load %arg14[%c0_3, %c0_4] : memref<1x2256xf32, #tpu.memory_space<vmem>>, vector<1x512xf32>
    %3 = arith.truncf %0 : vector<8x256xf32> to vector<8x256xbf16>
    %cst = arith.constant dense<0.000000e+00> : vector<8x512xf32>
    %4 = tpu.matmul %3, %1, %cst {dimension_numbers = #tpu.dot_dimension_numbers<[1], [0], [0], [1], [0, 0, 1, 1], [], []>} : vector<8x256xbf16>, vector<256x512xbf16>, vector<8x512xf32> -> vector<8x512xf32>
    %5 = vector.broadcast %2 : vector<1x512xf32> to vector<8x512xf32>
    %6 = arith.addf %4, %5 : vector<8x512xf32>
    %cst_5 = arith.constant 0.000000e+00 : f32
    %7 = vector.broadcast %cst_5 : f32 to vector<8x512xf32>
    %8 = arith.maximumf %6, %7 : vector<8x512xf32>
    %c0_6 = arith.constant 0 : index
    %c0_7 = arith.constant 0 : index
    %9 = vector.load %arg3[%c0_6, %c0_7] : memref<512x256xbf16, #tpu.memory_space<vmem>>, vector<512x256xbf16>
    %c0_8 = arith.constant 0 : index
    %c512 = arith.constant 512 : index
    %10 = vector.load %arg14[%c0_8, %c512] : memref<1x2256xf32, #tpu.memory_space<vmem>>, vector<1x256xf32>
    %11 = arith.truncf %8 : vector<8x512xf32> to vector<8x512xbf16>
    %cst_9 = arith.constant dense<0.000000e+00> : vector<8x256xf32>
    %12 = tpu.matmul %11, %9, %cst_9 {dimension_numbers = #tpu.dot_dimension_numbers<[1], [0], [0], [1], [0, 0, 1, 1], [], []>} : vector<8x512xbf16>, vector<512x256xbf16>, vector<8x256xf32> -> vector<8x256xf32>
    %13 = vector.broadcast %10 : vector<1x256xf32> to vector<8x256xf32>
    %14 = arith.addf %12, %13 : vector<8x256xf32>
    %cst_10 = arith.constant 0.000000e+00 : f32
    %15 = vector.broadcast %cst_10 : f32 to vector<8x256xf32>
    %16 = arith.maximumf %14, %15 : vector<8x256xf32>
    %c0_11 = arith.constant 0 : index
    %c0_12 = arith.constant 0 : index
    %17 = vector.load %arg4[%c0_11, %c0_12] : memref<256x128xbf16, #tpu.memory_space<vmem>>, vector<256x128xbf16>
    %c0_13 = arith.constant 0 : index
    %c768 = arith.constant 768 : index
    %18 = vector.load %arg14[%c0_13, %c768] : memref<1x2256xf32, #tpu.memory_space<vmem>>, vector<1x128xf32>
    %19 = arith.truncf %16 : vector<8x256xf32> to vector<8x256xbf16>
    %cst_14 = arith.constant dense<0.000000e+00> : vector<8x128xf32>
    %20 = tpu.matmul %19, %17, %cst_14 {dimension_numbers = #tpu.dot_dimension_numbers<[1], [0], [0], [1], [0, 0, 1, 1], [], []>} : vector<8x256xbf16>, vector<256x128xbf16>, vector<8x128xf32> -> vector<8x128xf32>
    %21 = vector.broadcast %18 : vector<1x128xf32> to vector<8x128xf32>
    %22 = arith.addf %20, %21 : vector<8x128xf32>
    %cst_15 = arith.constant 0.000000e+00 : f32
    %23 = vector.broadcast %cst_15 : f32 to vector<8x128xf32>
    %24 = arith.maximumf %22, %23 : vector<8x128xf32>
    %c0_16 = arith.constant 0 : index
    %c0_17 = arith.constant 0 : index
    %25 = vector.load %arg5[%c0_16, %c0_17] : memref<128x64xbf16, #tpu.memory_space<vmem>>, vector<128x64xbf16>
    %c0_18 = arith.constant 0 : index
    %c896 = arith.constant 896 : index
    %26 = vector.load %arg14[%c0_18, %c896] : memref<1x2256xf32, #tpu.memory_space<vmem>>, vector<1x64xf32>
    %27 = arith.truncf %24 : vector<8x128xf32> to vector<8x128xbf16>
    %cst_19 = arith.constant dense<0.000000e+00> : vector<8x64xf32>
    %28 = tpu.matmul %27, %25, %cst_19 {dimension_numbers = #tpu.dot_dimension_numbers<[1], [0], [0], [1], [0, 0, 1, 1], [], []>} : vector<8x128xbf16>, vector<128x64xbf16>, vector<8x64xf32> -> vector<8x64xf32>
    %29 = vector.broadcast %26 : vector<1x64xf32> to vector<8x64xf32>
    %30 = arith.addf %28, %29 : vector<8x64xf32>
    %cst_20 = arith.constant 0.000000e+00 : f32
    %31 = vector.broadcast %cst_20 : f32 to vector<8x64xf32>
    %32 = arith.maximumf %30, %31 : vector<8x64xf32>
    %c0_21 = arith.constant 0 : index
    %c0_22 = arith.constant 0 : index
    %33 = vector.load %arg6[%c0_21, %c0_22] : memref<64x32xbf16, #tpu.memory_space<vmem>>, vector<64x32xbf16>
    %c0_23 = arith.constant 0 : index
    %c960 = arith.constant 960 : index
    %34 = vector.load %arg14[%c0_23, %c960] : memref<1x2256xf32, #tpu.memory_space<vmem>>, vector<1x32xf32>
    %35 = arith.truncf %32 : vector<8x64xf32> to vector<8x64xbf16>
    %cst_24 = arith.constant dense<0.000000e+00> : vector<8x32xf32>
    %36 = tpu.matmul %35, %33, %cst_24 {dimension_numbers = #tpu.dot_dimension_numbers<[1], [0], [0], [1], [0, 0, 1, 1], [], []>} : vector<8x64xbf16>, vector<64x32xbf16>, vector<8x32xf32> -> vector<8x32xf32>
    %37 = vector.broadcast %34 : vector<1x32xf32> to vector<8x32xf32>
    %38 = arith.addf %36, %37 : vector<8x32xf32>
    %cst_25 = arith.constant 0.000000e+00 : f32
    %39 = vector.broadcast %cst_25 : f32 to vector<8x32xf32>
    %40 = arith.maximumf %38, %39 : vector<8x32xf32>
    %c0_26 = arith.constant 0 : index
    %c0_27 = arith.constant 0 : index
    %41 = vector.load %arg7[%c0_26, %c0_27] : memref<32x16xbf16, #tpu.memory_space<vmem>>, vector<32x16xbf16>
    %c0_28 = arith.constant 0 : index
    %c992 = arith.constant 992 : index
    %42 = vector.load %arg14[%c0_28, %c992] : memref<1x2256xf32, #tpu.memory_space<vmem>>, vector<1x16xf32>
    %43 = arith.truncf %40 : vector<8x32xf32> to vector<8x32xbf16>
    %cst_29 = arith.constant dense<0.000000e+00> : vector<8x16xf32>
    %44 = tpu.matmul %43, %41, %cst_29 {dimension_numbers = #tpu.dot_dimension_numbers<[1], [0], [0], [1], [0, 0, 1, 1], [], []>} : vector<8x32xbf16>, vector<32x16xbf16>, vector<8x16xf32> -> vector<8x16xf32>
    %45 = vector.broadcast %42 : vector<1x16xf32> to vector<8x16xf32>
    %46 = arith.addf %44, %45 : vector<8x16xf32>
    %c0_30 = arith.constant 0 : index
    %c0_31 = arith.constant 0 : index
    %47 = vector.load %arg16[%c0_30, %c0_31] : memref<8x16xf32, #tpu.memory_space<vmem>>, vector<8x16xf32>
    tpu.vector_store %arg16[%c0_30, %c0_31], %46 {strides = array<i32>} : memref<8x16xf32, #tpu.memory_space<vmem>>, vector<8x16xf32>,
    %c0_32 = arith.constant 0 : index
    %c0_33 = arith.constant 0 : index
    %48 = vector.load %arg8[%c0_32, %c0_33] : memref<16x32xbf16, #tpu.memory_space<vmem>>, vector<16x32xbf16>
    %c0_34 = arith.constant 0 : index
    %c1008 = arith.constant 1008 : index
    %49 = vector.load %arg14[%c0_34, %c1008] : memref<1x2256xf32, #tpu.memory_space<vmem>>, vector<1x32xf32>
    %50 = arith.truncf %46 : vector<8x16xf32> to vector<8x16xbf16>
    %cst_35 = arith.constant dense<0.000000e+00> : vector<8x32xf32>
    %51 = tpu.matmul %50, %48, %cst_35 {dimension_numbers = #tpu.dot_dimension_numbers<[1], [0], [0], [1], [0, 0, 1, 1], [], []>} : vector<8x16xbf16>, vector<16x32xbf16>, vector<8x32xf32> -> vector<8x32xf32>
    %52 = vector.broadcast %49 : vector<1x32xf32> to vector<8x32xf32>
    %53 = arith.addf %51, %52 : vector<8x32xf32>
    %cst_36 = arith.constant 0.000000e+00 : f32
    %54 = vector.broadcast %cst_36 : f32 to vector<8x32xf32>
    %55 = arith.maximumf %53, %54 : vector<8x32xf32>
    %c0_37 = arith.constant 0 : index
    %c0_38 = arith.constant 0 : index
    %56 = vector.load %arg9[%c0_37, %c0_38] : memref<32x64xbf16, #tpu.memory_space<vmem>>, vector<32x64xbf16>
    %c0_39 = arith.constant 0 : index
    %c1040 = arith.constant 1040 : index
    %57 = vector.load %arg14[%c0_39, %c1040] : memref<1x2256xf32, #tpu.memory_space<vmem>>, vector<1x64xf32>
    %58 = arith.truncf %55 : vector<8x32xf32> to vector<8x32xbf16>
    %cst_40 = arith.constant dense<0.000000e+00> : vector<8x64xf32>
    %59 = tpu.matmul %58, %56, %cst_40 {dimension_numbers = #tpu.dot_dimension_numbers<[1], [0], [0], [1], [0, 0, 1, 1], [], []>} : vector<8x32xbf16>, vector<32x64xbf16>, vector<8x64xf32> -> vector<8x64xf32>
    %60 = vector.broadcast %57 : vector<1x64xf32> to vector<8x64xf32>
    %61 = arith.addf %59, %60 : vector<8x64xf32>
    %cst_41 = arith.constant 0.000000e+00 : f32
    %62 = vector.broadcast %cst_41 : f32 to vector<8x64xf32>
    %63 = arith.maximumf %61, %62 : vector<8x64xf32>
    %c0_42 = arith.constant 0 : index
    %c0_43 = arith.constant 0 : index
    %64 = vector.load %arg10[%c0_42, %c0_43] : memref<64x128xbf16, #tpu.memory_space<vmem>>, vector<64x128xbf16>
    %c0_44 = arith.constant 0 : index
    %c1104 = arith.constant 1104 : index
    %65 = vector.load %arg14[%c0_44, %c1104] : memref<1x2256xf32, #tpu.memory_space<vmem>>, vector<1x128xf32>
    %66 = arith.truncf %63 : vector<8x64xf32> to vector<8x64xbf16>
    %cst_45 = arith.constant dense<0.000000e+00> : vector<8x128xf32>
    %67 = tpu.matmul %66, %64, %cst_45 {dimension_numbers = #tpu.dot_dimension_numbers<[1], [0], [0], [1], [0, 0, 1, 1], [], []>} : vector<8x64xbf16>, vector<64x128xbf16>, vector<8x128xf32> -> vector<8x128xf32>
    %68 = vector.broadcast %65 : vector<1x128xf32> to vector<8x128xf32>
    %69 = arith.addf %67, %68 : vector<8x128xf32>
    %cst_46 = arith.constant 0.000000e+00 : f32
    %70 = vector.broadcast %cst_46 : f32 to vector<8x128xf32>
    %71 = arith.maximumf %69, %70 : vector<8x128xf32>
    %c0_47 = arith.constant 0 : index
    %c0_48 = arith.constant 0 : index
    %72 = vector.load %arg11[%c0_47, %c0_48] : memref<128x256xbf16, #tpu.memory_space<vmem>>, vector<128x256xbf16>
    %c0_49 = arith.constant 0 : index
    %c1232 = arith.constant 1232 : index
    %73 = vector.load %arg14[%c0_49, %c1232] : memref<1x2256xf32, #tpu.memory_space<vmem>>, vector<1x256xf32>
    %74 = arith.truncf %71 : vector<8x128xf32> to vector<8x128xbf16>
    %cst_50 = arith.constant dense<0.000000e+00> : vector<8x256xf32>
    %75 = tpu.matmul %74, %72, %cst_50 {dimension_numbers = #tpu.dot_dimension_numbers<[1], [0], [0], [1], [0, 0, 1, 1], [], []>} : vector<8x128xbf16>, vector<128x256xbf16>, vector<8x256xf32> -> vector<8x256xf32>
    %76 = vector.broadcast %73 : vector<1x256xf32> to vector<8x256xf32>
    %77 = arith.addf %75, %76 : vector<8x256xf32>
    %cst_51 = arith.constant 0.000000e+00 : f32
    %78 = vector.broadcast %cst_51 : f32 to vector<8x256xf32>
    %79 = arith.maximumf %77, %78 : vector<8x256xf32>
    %c0_52 = arith.constant 0 : index
    %c0_53 = arith.constant 0 : index
    %80 = vector.load %arg12[%c0_52, %c0_53] : memref<256x512xbf16, #tpu.memory_space<vmem>>, vector<256x512xbf16>
    %c0_54 = arith.constant 0 : index
    %c1488 = arith.constant 1488 : index
    %81 = vector.load %arg14[%c0_54, %c1488] : memref<1x2256xf32, #tpu.memory_space<vmem>>, vector<1x512xf32>
    %82 = arith.truncf %79 : vector<8x256xf32> to vector<8x256xbf16>
    %cst_55 = arith.constant dense<0.000000e+00> : vector<8x512xf32>
    %83 = tpu.matmul %82, %80, %cst_55 {dimension_numbers = #tpu.dot_dimension_numbers<[1], [0], [0], [1], [0, 0, 1, 1], [], []>} : vector<8x256xbf16>, vector<256x512xbf16>, vector<8x512xf32> -> vector<8x512xf32>
    %84 = vector.broadcast %81 : vector<1x512xf32> to vector<8x512xf32>
    %85 = arith.addf %83, %84 : vector<8x512xf32>
    %cst_56 = arith.constant 0.000000e+00 : f32
    %86 = vector.broadcast %cst_56 : f32 to vector<8x512xf32>
    %87 = arith.maximumf %85, %86 : vector<8x512xf32>
    %c0_57 = arith.constant 0 : index
    %c0_58 = arith.constant 0 : index
    %88 = vector.load %arg13[%c0_57, %c0_58] : memref<512x256xbf16, #tpu.memory_space<vmem>>, vector<512x256xbf16>
    %c0_59 = arith.constant 0 : index
    %c2000 = arith.constant 2000 : index
    %89 = vector.load %arg14[%c0_59, %c2000] : memref<1x2256xf32, #tpu.memory_space<vmem>>, vector<1x256xf32>
    %90 = arith.truncf %87 : vector<8x512xf32> to vector<8x512xbf16>
    %cst_60 = arith.constant dense<0.000000e+00> : vector<8x256xf32>
    %91 = tpu.matmul %90, %88, %cst_60 {dimension_numbers = #tpu.dot_dimension_numbers<[1], [0], [0], [1], [0, 0, 1, 1], [], []>} : vector<8x512xbf16>, vector<512x256xbf16>, vector<8x256xf32> -> vector<8x256xf32>
    %92 = vector.broadcast %89 : vector<1x256xf32> to vector<8x256xf32>
    %93 = arith.addf %91, %92 : vector<8x256xf32>
    %94 = arith.negf %93 : vector<8x256xf32>
    %95 = math.exp %94 : vector<8x256xf32>
    %cst_61 = arith.constant 1.000000e+00 : f32
    %96 = vector.broadcast %cst_61 : f32 to vector<8x256xf32>
    %97 = arith.addf %96, %95 : vector<8x256xf32>
    %98 = arith.divf %96, %97 : vector<8x256xf32>
    %c0_62 = arith.constant 0 : index
    %c0_63 = arith.constant 0 : index
    %99 = vector.load %arg15[%c0_62, %c0_63] : memref<8x256xf32, #tpu.memory_space<vmem>>, vector<8x256xf32>
    tpu.vector_store %arg15[%c0_62, %c0_63], %98 {strides = array<i32>} : memref<8x256xf32, #tpu.memory_space<vmem>>, vector<8x256xf32>,
    return
  }
  func.func @transform_0(%arg0: i32) -> (i32, i32) {
    %c0_i32 = arith.constant 0 : i32
    %c0_i32_0 = arith.constant 0 : i32
    return %arg0, %c0_i32 : i32, i32
  }
  func.func @transform_1(%arg0: i32) -> (i32, i32) {
    %c0_i32 = arith.constant 0 : i32
    %c0_i32_0 = arith.constant 0 : i32
    %c0_i32_1 = arith.constant 0 : i32
    return %c0_i32, %c0_i32_0 : i32, i32
  }
  func.func @transform_2(%arg0: i32) -> (i32, i32) {
    %c0_i32 = arith.constant 0 : i32
    %c0_i32_0 = arith.constant 0 : i32
    %c0_i32_1 = arith.constant 0 : i32
    return %c0_i32, %c0_i32_0 : i32, i32
  }
  func.func @transform_3(%arg0: i32) -> (i32, i32) {
    %c0_i32 = arith.constant 0 : i32
    %c0_i32_0 = arith.constant 0 : i32
    %c0_i32_1 = arith.constant 0 : i32
    return %c0_i32, %c0_i32_0 : i32, i32
  }
  func.func @transform_4(%arg0: i32) -> (i32, i32) {
    %c0_i32 = arith.constant 0 : i32
    %c0_i32_0 = arith.constant 0 : i32
    %c0_i32_1 = arith.constant 0 : i32
    return %c0_i32, %c0_i32_0 : i32, i32
  }
  func.func @transform_5(%arg0: i32) -> (i32, i32) {
    %c0_i32 = arith.constant 0 : i32
    %c0_i32_0 = arith.constant 0 : i32
    %c0_i32_1 = arith.constant 0 : i32
    return %c0_i32, %c0_i32_0 : i32, i32
  }
  func.func @transform_6(%arg0: i32) -> (i32, i32) {
    %c0_i32 = arith.constant 0 : i32
    %c0_i32_0 = arith.constant 0 : i32
    %c0_i32_1 = arith.constant 0 : i32
    return %c0_i32, %c0_i32_0 : i32, i32
  }
  func.func @transform_7(%arg0: i32) -> (i32, i32) {
    %c0_i32 = arith.constant 0 : i32
    %c0_i32_0 = arith.constant 0 : i32
    %c0_i32_1 = arith.constant 0 : i32
    return %c0_i32, %c0_i32_0 : i32, i32
  }
  func.func @transform_8(%arg0: i32) -> (i32, i32) {
    %c0_i32 = arith.constant 0 : i32
    %c0_i32_0 = arith.constant 0 : i32
    %c0_i32_1 = arith.constant 0 : i32
    return %c0_i32, %c0_i32_0 : i32, i32
  }
  func.func @transform_9(%arg0: i32) -> (i32, i32) {
    %c0_i32 = arith.constant 0 : i32
    %c0_i32_0 = arith.constant 0 : i32
    %c0_i32_1 = arith.constant 0 : i32
    return %c0_i32, %c0_i32_0 : i32, i32
  }
  func.func @transform_10(%arg0: i32) -> (i32, i32) {
    %c0_i32 = arith.constant 0 : i32
    %c0_i32_0 = arith.constant 0 : i32
    %c0_i32_1 = arith.constant 0 : i32
    return %c0_i32, %c0_i32_0 : i32, i32
  }
  func.func @transform_11(%arg0: i32) -> (i32, i32) {
    %c0_i32 = arith.constant 0 : i32
    %c0_i32_0 = arith.constant 0 : i32
    %c0_i32_1 = arith.constant 0 : i32
    return %c0_i32, %c0_i32_0 : i32, i32
  }
  func.func @transform_12(%arg0: i32) -> (i32, i32) {
    %c0_i32 = arith.constant 0 : i32
    %c0_i32_0 = arith.constant 0 : i32
    %c0_i32_1 = arith.constant 0 : i32
    return %c0_i32, %c0_i32_0 : i32, i32
  }
  func.func @transform_13(%arg0: i32) -> (i32, i32) {
    %c0_i32 = arith.constant 0 : i32
    %c0_i32_0 = arith.constant 0 : i32
    %c0_i32_1 = arith.constant 0 : i32
    return %c0_i32, %c0_i32_0 : i32, i32
  }
  func.func @transform_14(%arg0: i32) -> (i32, i32) {
    %c0_i32 = arith.constant 0 : i32
    %c0_i32_0 = arith.constant 0 : i32
    return %arg0, %c0_i32 : i32, i32
  }
  func.func @transform_15(%arg0: i32) -> (i32, i32) {
    %c0_i32 = arith.constant 0 : i32
    %c0_i32_0 = arith.constant 0 : i32
    return %arg0, %c0_i32 : i32, i32
  }
}

</mosaic_0001>

<bundles_post_ra>
// kernel: ae_forward.1
= control target key start
LH: loop header
LB: loop body
LE: loop exit
PB: predicated region body
PF: predicated region fallthrough
CT: control target
= control target key end

     0   :  { %21 = vsyncpa [#allocation3], 0  ;;  %s4964_s0 = inlined_call_operand.vmem [shape: f32[8,256], index: 0, kind: input, shape index: {}]   ;;  %s4965_s1 = inlined_call_operand.hbm [shape: bf16[256,512], index: 1, kind: input, shape index: {}]   ;;  %s4966_s2 = inlined_call_operand.hbm [shape: bf16[512,256], index: 2, kind: input, shape index: {}]   ;;  %s4967_s3 = inlined_call_operand.vmem [shape: bf16[256,128], index: 3, kind: input, shape index: {}]   ;;  %s4968_s4 = inlined_call_operand.vmem [shape: bf16[128,64], index: 4, kind: input, shape index: {}]   ;;  %s4969_s5 = inlined_call_operand.vmem [shape: bf16[64,32], index: 5, kind: input, shape index: {}]   ;;  %s4970_s6 = inlined_call_operand.vmem [shape: bf16[32,16], index: 6, kind: input, shape index: {}]   ;;  %s4971_s7 = inlined_call_operand.vmem [shape: bf16[16,32], index: 7, kind: input, shape index: {}]   ;;  %s4972_s8 = inlined_call_operand.hbm [shape: bf16[32,64], index: 8, kind: input, shape index: {}]   ;;  %s4973_s9 = inlined_call_operand.hbm [shape: bf16[64,128], index: 9, kind: input, shape index: {}]   ;;  %s4974_s10 = inlined_call_operand.hbm [shape: bf16[128,256], index: 10, kind: input, shape index: {}]   ;;  %s4975_s11 = inlined_call_operand.hbm [shape: bf16[256,512], index: 11, kind: input, shape index: {}]   ;;  %s4976_s12 = inlined_call_operand.hbm [shape: bf16[512,256], index: 12, kind: input, shape index: {}]   ;;  %s4977_s13 = inlined_call_operand.hbm [shape: f32[1,2256], index: 13, kind: input, shape index: {}]   ;;  %s4978_s14 = inlined_call_operand.vmem [shape: f32[8,256], index: 14, kind: output, shape index: {0}]   ;;  %s4979_s15 = inlined_call_operand.vmem [shape: f32[8,16], index: 15, kind: output, shape index: {1}]  }
   0x1   :  { %22 = vsyncpa [#allocation5], 0 }
   0x2   :  { %23 = vsyncpa [#allocation8], 0 }
   0x3   :  { %24 = vsyncpa [#allocation11], 0  ;;  %s45_s20 = sshll.u32 %s4966_s2, 4  ;;  %s46_s20 = int_to_ptr.hbm [resolvable:$true] %s45_s20 }
   0x4   :  { %25 = vsyncpa [#allocation14], 0  ;;  %s4654_s21 = smov [#allocation4]   ;;  %s4980_s23 = smov 128  }
   0x5   :  { %s47_s22 = sshll.u32 %s4654_s21, 4  ;;  %s4656_s24 = smov 8   ;;  %s48_s22 = int_to_ptr.vmem [resolvable:$true] %s47_s22 }
   0x6   :  { %53 = dma.hbm_to_vmem [thread:$0]  %s46_s20, 8192, %s48_s22, [#allocation5], %s4980_s23, %s4980_s23, %s4656_s24  }
   0x7   :  { %s81_s27 = sshll.u32 %s4973_s9, 4  ;;  %s4657_s28 = smov [#allocation7]   ;;  %s82_s27 = int_to_ptr.hbm [resolvable:$true] %s81_s27 }
   0x8   :  { %s83_s29 = sshll.u32 %s4657_s28, 4  ;;  %s4658_s2 = smov 64   ;;  %s84_s29 = int_to_ptr.vmem [resolvable:$true] %s83_s29 }
   0x9   :  { %s4659_s30 = smov 4   ;;  %s107_s18 = sshll.u32 %s4975_s11, 4  ;;  %s108_s18 = int_to_ptr.hbm [resolvable:$true] %s107_s18 }
   0xa   :  { %89 = dma.hbm_to_vmem [thread:$0]  %s82_s27, 512, %s84_s29, [#allocation8], %s4658_s2, %s4658_s2, %s4659_s30  }
   0xb   :  { %s4660_s19 = smov [#allocation10]   ;;  %s32_s9 = sshll.u32 %s4965_s1, 4  ;;  %s33_s9 = int_to_ptr.hbm [resolvable:$true] %s32_s9 }
   0xc   :  { %s109_s20 = sshll.u32 %s4660_s19, 4  ;;  %s4661_s25 = smov 256   ;;  %s110_s20 = int_to_ptr.vmem [resolvable:$true] %s109_s20 }
   0xd   :  { %s4662_s26 = smov 16   ;;  %s4663_s28 = smov [#allocation2]  }
   0xe   :  { %115 = dma.hbm_to_vmem [thread:$0]  %s108_s18, 8192, %s110_s20, [#allocation11], %s4661_s25, %s4661_s25, %s4662_s26  }
   0xf   :  { %s34_s23 = sshll.u32 %s4663_s28, 4  ;;  %s68_s16 = sshll.u32 %s4972_s8, 4  ;;  %s35_s23 = int_to_ptr.vmem [resolvable:$true] %s34_s23  ;;  %s69_s16 = int_to_ptr.hbm [resolvable:$true] %s68_s16 }
  0x10   :  { %40 = dma.hbm_to_vmem [thread:$0]  %s33_s9, 8192, %s35_s23, [#allocation3], %s4661_s25, %s4661_s25, %s4662_s26  }
  0x11   :  { %s94_s19 = sshll.u32 %s4974_s10, 4  ;;  %s4664_s1 = smov [#allocation6]   ;;  %s95_s19 = int_to_ptr.hbm [resolvable:$true] %s94_s19 }
  0x12   :  { %s70_s21 = sshll.u32 %s4664_s1, 4  ;;  %s4665_s18 = smov [#allocation9]   ;;  %s71_s21 = int_to_ptr.vmem [resolvable:$true] %s70_s21 }
  0x13   :  { %76 = dma.hbm_to_vmem [thread:$0]  %s69_s16, 256, %s71_s21, [#allocation5], %s4658_s2, %s4658_s2, %s4659_s30  }
  0x14   :  { %s96_s20 = sshll.u32 %s4665_s18, 4  ;;  %s120_s8 = sshll.u32 %s4976_s12, 4  ;;  %s97_s20 = int_to_ptr.vmem [resolvable:$true] %s96_s20  ;;  %s121_s8 = int_to_ptr.hbm [resolvable:$true] %s120_s8 }
  0x15   :  { %s4982_s23 = smov 128   ;;  %s134_s25 = sshll.u32 %s4977_s13, 4  ;;  %s135_s25 = int_to_ptr.hbm [resolvable:$true] %s134_s25 }
  0x16   :  { %102 = dma.hbm_to_vmem [thread:$0]  %s95_s19, 2048, %s97_s20, [#allocation8], %s4982_s23, %s4982_s23, %s4656_s24  }
  0x17   :  { %s4666_s27 = smov [#allocation12]   ;;  %s4667_s30 = smov [#allocation13]  }
  0x18   :  { %s122_s29 = sshll.u32 %s4666_s27, 4  ;;  %s136_s12 = sshll.u32 %s4667_s30, 4  ;;  %s123_s29 = int_to_ptr.vmem [resolvable:$true] %s122_s29  ;;  %s137_s12 = int_to_ptr.vmem [resolvable:$true] %s136_s12 }
  0x19   :  { %128 = dma.hbm_to_vmem [thread:$0]  %s121_s8, 8192, %s123_s29, [#allocation11], %s4982_s23, %s4982_s23, %s4656_s24  }
  0x1a   :  { %139 = dma.hbm_to_vmem [thread:$0]  %s135_s25, 288, %s137_s12, [#allocation14]  }
  0x1b   :  { %4644 = dma.done.wait [#allocation3], 8192  }
  0x1c   :  { %4645 = vsyncadd [#allocation3], 4294959104 }
  0x1d   :  { %4646 = dma.done.wait [#allocation5], 8448  }
  0x1e   :  { %4647 = vsyncadd [#allocation5], 4294958848 }
  0x1f   :  { %4648 = dma.done.wait [#allocation8], 2560  }
  0x20   :  { %4649 = vsyncadd [#allocation8], 4294964736 }
  0x21   :  { %4650 = dma.done.wait [#allocation11], 16384  }
  0x22   :  { %4651 = vsyncadd [#allocation11], 4294950912 }
  0x23   :  { %4652 = dma.done.wait [#allocation14], 288  }
  0x24   :  { %4653 = vsyncadd [#allocation14], 4294967008  ;;  %v2986_v0 = vld [vmem:[#allocation2 + $0xe0] sm:$0xf]  ;;  %v4145_v1 = vld [vmem:[#allocation2 + $0xec] sm:$0xf0] }
  0x25   :  { %v3114_v2 = vld [vmem:[#allocation2 + $0x1e0] sm:$0xf]  ;;  %v2987_v3 = vor.u32 %v4145_v1, %v2986_v0  ;;  %v4177_v4 = vld [vmem:[#allocation2 + $0x1ec] sm:$0xf0]  ;;  %v4143_v5 = vld [vmem:[#allocation2 + $0xe4] sm:$0xf] }
  0x26   :  { %v2988_v6 = vld [vmem:[#allocation2 + $0xf0] sm:$0xf0]  ;;  %v3115_v7 = vor.u32 %v4177_v4, %v3114_v2  ;;  %v4175_v9 = vld [vmem:[#allocation2 + $0x1e4] sm:$0xf]  ;;  %v2970_v11 = vld [vmem:[#allocation2 + $0xc0] sm:$0xf] }
  0x27   :  { %v2991_v8 = vor.u32 %v4143_v5, %v2988_v6  ;;  %v3116_v10 = vld [vmem:[#allocation2 + $0x1f0] sm:$0xf0]  ;;  %571 = vmatpush.bf16.msra.mxu0 %v2987_v3  ;;  %v4141_v13 = vld [vmem:[#allocation2 + $0xcc] sm:$0xf0]  ;;  %v3098_v14 = vld [vmem:[#allocation2 + $0x1c0] sm:$0xf] }
  0x28   :  { %v3119_v12 = vor.u32 %v4175_v9, %v3116_v10  ;;  %v4173_v15 = vld [vmem:[#allocation2 + $0x1cc] sm:$0xf0]  ;;  %584 = vmatpush.bf16.msra.mxu1 %v3115_v7  ;;  %v2971_v16 = vor.u32 %v4141_v13, %v2970_v11  ;;  %v4139_v18 = vld [vmem:[#allocation2 + $0xc4] sm:$0xf]  ;;  %v2972_v19 = vld [vmem:[#allocation2 + $0xd0] sm:$0xf0] }
  0x29   :  { %597 = vmatpush.bf16.msra.mxu2 %v2991_v8  ;;  %v3099_v17 = vor.u32 %v4173_v15, %v3098_v14  ;;  %v4171_v20 = vld [vmem:[#allocation2 + $0x1c4] sm:$0xf]  ;;  %v2975_v21 = vor.u32 %v4139_v18, %v2972_v19  ;;  %v3100_v22 = vld [vmem:[#allocation2 + $0x1d0] sm:$0xf0]  ;;  %v2954_v23 = vld [vmem:[#allocation2 + $0xa0] sm:$0xf] }
  0x2a   :  { %610 = vmatpush.bf16.msra.mxu3 %v3119_v12  ;;  %v4137_v24 = vld [vmem:[#allocation2 + $0xac] sm:$0xf0]  ;;  %v3103_v25 = vor.u32 %v4171_v20, %v3100_v22  ;;  %v3082_v26 = vld [vmem:[#allocation2 + $0x1a0] sm:$0xf]  ;;  %v4135_v28 = vld [vmem:[#allocation2 + $0xa4] sm:$0xf] }
  0x2b   :  { %v4169_v27 = vld [vmem:[#allocation2 + $0x1ac] sm:$0xf0]  ;;  %572 = vmatpush.bf16.msra.mxu0 %v2971_v16  ;;  %v2955_v29 = vor.u32 %v4137_v24, %v2954_v23  ;;  %v2956_v30 = vld [vmem:[#allocation2 + $0xb0] sm:$0xf0]  ;;  %v4167_v31 = vld [vmem:[#allocation2 + $0x1a4] sm:$0xf] }
  0x2c   :  { %v3084_v32 = vld [vmem:[#allocation2 + $0x1b0] sm:$0xf0]  ;;  %585 = vmatpush.bf16.msra.mxu1 %v3099_v17  ;;  %v3083_v33 = vor.u32 %v4169_v27, %v3082_v26  ;;  %v2959_v34 = vor.u32 %v4135_v28, %v2956_v30  ;;  %v2938_v35 = vld [vmem:[#allocation2 + $0x80] sm:$0xf]  ;;  %v4133_v36 = vld [vmem:[#allocation2 + $0x8c] sm:$0xf0] }
  0x2d   :  { %598 = vmatpush.bf16.msra.mxu2 %v2975_v21  ;;  %v3066_v37 = vld [vmem:[#allocation2 + $0x180] sm:$0xf]  ;;  %v3087_v38 = vor.u32 %v4167_v31, %v3084_v32  ;;  %v4165_v39 = vld [vmem:[#allocation2 + $0x18c] sm:$0xf0]  ;;  %v4131_v40 = vld [vmem:[#allocation2 + $0x84] sm:$0xf]  ;;  %v2939_v44 = vor.u32 %v4133_v36, %v2938_v35 }
  0x2e   :  { %611 = vmatpush.bf16.msra.mxu3 %v3103_v25  ;;  %v2940_v41 = vld [vmem:[#allocation2 + $0x90] sm:$0xf0]  ;;  %v4163_v42 = vld [vmem:[#allocation2 + $0x184] sm:$0xf]  ;;  %v3067_v45 = vor.u32 %v4165_v39, %v3066_v37  ;;  %v2922_v47 = vld [vmem:[#allocation2 + $0x60] sm:$0xf] }
  0x2f   :  { %v3068_v43 = vld [vmem:[#allocation2 + $0x190] sm:$0xf0]  ;;  %573 = vmatpush.bf16.msra.mxu0 %v2955_v29  ;;  %v2943_v46 = vor.u32 %v4131_v40, %v2940_v41  ;;  %v4129_v48 = vld [vmem:[#allocation2 + $0x6c] sm:$0xf0]  ;;  %v3050_v49 = vld [vmem:[#allocation2 + $0x160] sm:$0xf] }
  0x30   :  { %586 = vmatpush.bf16.msra.mxu1 %v3083_v33  ;;  %v3071_v50 = vor.u32 %v4163_v42, %v3068_v43  ;;  %v4161_v51 = vld [vmem:[#allocation2 + $0x16c] sm:$0xf0]  ;;  %v4127_v52 = vld [vmem:[#allocation2 + $0x64] sm:$0xf]  ;;  %v2924_v53 = vld [vmem:[#allocation2 + $0x70] sm:$0xf0]  ;;  %v2923_v56 = vor.u32 %v4129_v48, %v2922_v47 }
  0x31   :  { %599 = vmatpush.bf16.msra.mxu2 %v2959_v34  ;;  %v4159_v54 = vld [vmem:[#allocation2 + $0x164] sm:$0xf]  ;;  %v3052_v55 = vld [vmem:[#allocation2 + $0x170] sm:$0xf0]  ;;  %v3051_v57 = vor.u32 %v4161_v51, %v3050_v49  ;;  %v2927_v58 = vor.u32 %v4127_v52, %v2924_v53  ;;  %v2906_v59 = vld [vmem:[#allocation2 + $0x40] sm:$0xf] }
  0x32   :  { %612 = vmatpush.bf16.msra.mxu3 %v3087_v38  ;;  %v4125_v60 = vld [vmem:[#allocation2 + $0x4c] sm:$0xf0]  ;;  %v3034_v61 = vld [vmem:[#allocation2 + $0x140] sm:$0xf]  ;;  %v3055_v62 = vor.u32 %v4159_v54, %v3052_v55  ;;  %v4123_v0 = vld [vmem:[#allocation2 + $0x44] sm:$0xf] }
  0x33   :  { %574 = vmatpush.bf16.msra.mxu0 %v2939_v44  ;;  %v4157_v63 = vld [vmem:[#allocation2 + $0x14c] sm:$0xf0]  ;;  %v2908_v1 = vld [vmem:[#allocation2 + $0x50] sm:$0xf0]  ;;  %v4155_v2 = vld [vmem:[#allocation2 + $0x144] sm:$0xf]  ;;  %v2907_v4 = vor.u32 %v4125_v60, %v2906_v59 }
  0x34   :  { %587 = vmatpush.bf16.msra.mxu1 %v3067_v45  ;;  %v3036_v3 = vld [vmem:[#allocation2 + $0x150] sm:$0xf0]  ;;  %v3035_v5 = vor.u32 %v4157_v63, %v3034_v61  ;;  %v2911_v6 = vor.u32 %v4123_v0, %v2908_v1  ;;  %v2890_v7 = vld [vmem:[#allocation2 + $0x20] sm:$0xf]  ;;  %v4121_v8 = vld [vmem:[#allocation2 + $0x2c] sm:$0xf0] }
  0x35   :  { %600 = vmatpush.bf16.msra.mxu2 %v2943_v46  ;;  %v3018_v9 = vld [vmem:[#allocation2 + $0x120] sm:$0xf]  ;;  %v3039_v10 = vor.u32 %v4155_v2, %v3036_v3  ;;  %v4153_v11 = vld [vmem:[#allocation2 + $0x12c] sm:$0xf0]  ;;  %v4119_v12 = vld [vmem:[#allocation2 + $0x24] sm:$0xf]  ;;  %v2891_v16 = vor.u32 %v4121_v8, %v2890_v7 }
  0x36   :  { %613 = vmatpush.bf16.msra.mxu3 %v3071_v50  ;;  %v2892_v13 = vld [vmem:[#allocation2 + $0x30] sm:$0xf0]  ;;  %v4151_v14 = vld [vmem:[#allocation2 + $0x124] sm:$0xf]  ;;  %v2874_v17 = vld [vmem:[#allocation2] sm:$0xf]  ;;  %v3019_v19 = vor.u32 %v4153_v11, %v3018_v9 }
  0x37   :  { %575 = vmatpush.bf16.msra.mxu0 %v2923_v56  ;;  %v3020_v15 = vld [vmem:[#allocation2 + $0x130] sm:$0xf0]  ;;  %v4117_v18 = vld [vmem:[#allocation2 + $0xc] sm:$0xf0]  ;;  %v2895_v20 = vor.u32 %v4119_v12, %v2892_v13  ;;  %v3002_v21 = vld [vmem:[#allocation2 + $0x100] sm:$0xf] }
  0x38   :  { %588 = vmatpush.bf16.msra.mxu1 %v3051_v57  ;;  %v4149_v22 = vld [vmem:[#allocation2 + $0x10c] sm:$0xf0]  ;;  %v4115_v23 = vld [vmem:[#allocation2 + $0x4] sm:$0xf]  ;;  %v3023_v24 = vor.u32 %v4151_v14, %v3020_v15  ;;  %v2876_v25 = vld [vmem:[#allocation2 + $0x10] sm:$0xf0]  ;;  %v2875_v31 = vor.u32 %v4117_v18, %v2874_v17 }
  0x39   :  { %601 = vmatpush.bf16.msra.mxu2 %v2927_v58  ;;  %v4147_v26 = vld [vmem:[#allocation2 + $0x104] sm:$0xf]  ;;  %v3004_v27 = vld [vmem:[#allocation2 + $0x110] sm:$0xf0]  ;;  %v2994_v28 = vld [vmem:[#allocation2 + $0xe8] sm:$0xf]  ;;  %v3003_v35 = vor.u32 %v4149_v22, %v3002_v21  ;;  %v2879_v36 = vor.u32 %v4115_v23, %v2876_v25 }
  0x3a   :  { %614 = vmatpush.bf16.msra.mxu3 %v3055_v62  ;;  %v4146_v29 = vld [vmem:[#allocation2 + $0xf4] sm:$0xf0]  ;;  %v3122_v30 = vld [vmem:[#allocation2 + $0x1e8] sm:$0xf]  ;;  %v4144_v33 = vld [vmem:[#allocation2 + $0xec] sm:$0xf]  ;;  %v3007_v40 = vor.u32 %v4147_v26, %v3004_v27 }
  0x3b   :  { %576 = vmatpush.bf16.msra.mxu0 %v2907_v4  ;;  %v4178_v32 = vld [vmem:[#allocation2 + $0x1f4] sm:$0xf0]  ;;  %v2996_v34 = vld [vmem:[#allocation2 + $0xf8] sm:$0xf0]  ;;  %v4176_v37 = vld [vmem:[#allocation2 + $0x1ec] sm:$0xf]  ;;  %v2995_v41 = vor.u32 %v4146_v29, %v2994_v28 }
  0x3c   :  { %589 = vmatpush.bf16.msra.mxu1 %v3035_v5  ;;  %v3124_v38 = vld [vmem:[#allocation2 + $0x1f8] sm:$0xf0]  ;;  %v173_v39 = vld [vmem:[%s4964_s0] sm:$0xff]  ;;  %v174_v42 = vld [vmem:[%s4964_s0 + $0x8] sm:$0xff]  ;;  %v3123_v43 = vor.u32 %v4178_v32, %v3122_v30  ;;  %v2999_v44 = vor.u32 %v4144_v33, %v2996_v34  ;;  %vm1459_vm0 = vcmask 523264   ;;  %vm1497_vm1 = vcmask 261120  }
  0x3d   :  { %602 = vmatpush.bf16.msra.mxu2 %v2911_v6  ;;  %v2978_v45 = vld [vmem:[#allocation2 + $0xc8] sm:$0xf]  ;;  %v4142_v46 = vld [vmem:[#allocation2 + $0xd4] sm:$0xf0]  ;;  %v3127_v48 = vor.u32 %v4176_v37, %v3124_v38  ;;  %v4796_v49 = vpack.c.bf16 %v173_v39, %v173_v39  ;;  %v4140_v51 = vld [vmem:[#allocation2 + $0xcc] sm:$0xf]  ;;  %v4798_v53 = vpack.c.bf16 %v174_v42, %v174_v42 }
  0x3e   :  { %615 = vmatpush.bf16.msra.mxu3 %v3039_v10  ;;  %v3106_v47 = vld [vmem:[#allocation2 + $0x1c8] sm:$0xf]  ;;  %v4174_v50 = vld [vmem:[#allocation2 + $0x1d4] sm:$0xf0]  ;;  %v2980_v52 = vld [vmem:[#allocation2 + $0xd8] sm:$0xf0]  ;;  %v2979_v56 = vor.u32 %v4142_v46, %v2978_v45 }
  0x3f   :  { %577 = vmatpush.bf16.msra.mxu0 %v2891_v16  ;;  %v4172_v54 = vld [vmem:[#allocation2 + $0x1cc] sm:$0xf]  ;;  %v3108_v55 = vld [vmem:[#allocation2 + $0x1d8] sm:$0xf0]  ;;  %v3107_v57 = vor.u32 %v4174_v50, %v3106_v47  ;;  %v2983_v58 = vor.u32 %v4140_v51, %v2980_v52  ;;  %v2962_v59 = vld [vmem:[#allocation2 + $0xa8] sm:$0xf] }
  0x40   :  { %590 = vmatpush.bf16.msra.mxu1 %v3019_v19  ;;  %v4138_v60 = vld [vmem:[#allocation2 + $0xb4] sm:$0xf0]  ;;  %v3090_v61 = vld [vmem:[#allocation2 + $0x1a8] sm:$0xf]  ;;  %v3111_v62 = vor.u32 %v4172_v54, %v3108_v55  ;;  %v4136_v0 = vld [vmem:[#allocation2 + $0xac] sm:$0xf] }
  0x41   :  { %603 = vmatpush.bf16.msra.mxu2 %v2895_v20  ;;  %v4170_v63 = vld [vmem:[#allocation2 + $0x1b4] sm:$0xf0]  ;;  %v2964_v1 = vld [vmem:[#allocation2 + $0xb8] sm:$0xf0]  ;;  %v4168_v2 = vld [vmem:[#allocation2 + $0x1ac] sm:$0xf]  ;;  %v2963_v4 = vor.u32 %v4138_v60, %v2962_v59 }
  0x42   :  { %616 = vmatpush.bf16.msra.mxu3 %v3023_v24  ;;  %v3092_v3 = vld [vmem:[#allocation2 + $0x1b8] sm:$0xf0]  ;;  %v3091_v5 = vor.u32 %v4170_v63, %v3090_v61  ;;  %v2967_v6 = vor.u32 %v4136_v0, %v2964_v1  ;;  %v2946_v7 = vld [vmem:[#allocation2 + $0x88] sm:$0xf]  ;;  %v4134_v8 = vld [vmem:[#allocation2 + $0x94] sm:$0xf0] }
  0x43   :  { %578 = vmatpush.bf16.msra.mxu0 %v2875_v31  ;;  %v3074_v9 = vld [vmem:[#allocation2 + $0x188] sm:$0xf]  ;;  %v3095_v10 = vor.u32 %v4168_v2, %v3092_v3  ;;  %v4166_v11 = vld [vmem:[#allocation2 + $0x194] sm:$0xf0]  ;;  %v4132_v12 = vld [vmem:[#allocation2 + $0x8c] sm:$0xf]  ;;  %v2947_v16 = vor.u32 %v4134_v8, %v2946_v7 }
  0x44   :  { %591 = vmatpush.bf16.msra.mxu1 %v3003_v35  ;;  %v2948_v13 = vld [vmem:[#allocation2 + $0x98] sm:$0xf0]  ;;  %v4164_v14 = vld [vmem:[#allocation2 + $0x18c] sm:$0xf]  ;;  %v3075_v17 = vor.u32 %v4166_v11, %v3074_v9  ;;  %v2930_v19 = vld [vmem:[#allocation2 + $0x68] sm:$0xf] }
  0x45   :  { %604 = vmatpush.bf16.msra.mxu2 %v2879_v36  ;;  %v3076_v15 = vld [vmem:[#allocation2 + $0x198] sm:$0xf0]  ;;  %v2951_v18 = vor.u32 %v4132_v12, %v2948_v13  ;;  %v4130_v20 = vld [vmem:[#allocation2 + $0x74] sm:$0xf0]  ;;  %v3058_v21 = vld [vmem:[#allocation2 + $0x168] sm:$0xf] }
  0x46   :  { %617 = vmatpush.bf16.msra.mxu3 %v3007_v40  ;;  %579 = vmatmul.bf16.vlgmr.msra.gmra.mxu0 %v4796_v49  ;;  %v3079_v22 = vor.u32 %v4164_v14, %v3076_v15  ;;  %v4162_v23 = vld [vmem:[#allocation2 + $0x174] sm:$0xf0]  ;;  %v4128_v24 = vld [vmem:[#allocation2 + $0x6c] sm:$0xf]  ;;  %v2932_v25 = vld [vmem:[#allocation2 + $0x78] sm:$0xf0]  ;;  %v2931_v28 = vor.u32 %v4130_v20, %v2930_v19 }
  0x47   :  { %623 = vmatpush.bf16.msrb.mxu0 %v2995_v41  ;;  %592 = vmatmul.bf16.vlgmr.msra.gmra.mxu1 %v4798_v53  ;;  %v4160_v26 = vld [vmem:[#allocation2 + $0x16c] sm:$0xf]  ;;  %v3060_v27 = vld [vmem:[#allocation2 + $0x178] sm:$0xf0]  ;;  %v3059_v29 = vor.u32 %v4162_v23, %v3058_v21  ;;  %v2935_v30 = vor.u32 %v4128_v24, %v2932_v25  ;;  %v2914_v31 = vld [vmem:[#allocation2 + $0x48] sm:$0xf] }
  0x48   :  { %636 = vmatpush.bf16.msrb.mxu1 %v3123_v43  ;;  %605 = vmatmul.bf16.vlgmr.msra.gmra.mxu2 %v4796_v49  ;;  %v4126_v32 = vld [vmem:[#allocation2 + $0x54] sm:$0xf0]  ;;  %v3042_v33 = vld [vmem:[#allocation2 + $0x148] sm:$0xf]  ;;  %v3063_v34 = vor.u32 %v4160_v26, %v3060_v27  ;;  %v4124_v36 = vld [vmem:[#allocation2 + $0x4c] sm:$0xf] }
  0x49   :  { %649 = vmatpush.bf16.msrb.mxu2 %v2999_v44  ;;  %618 = vmatmul.bf16.vlgmr.msra.gmra.mxu3 %v4798_v53  ;;  %v4158_v35 = vld [vmem:[#allocation2 + $0x154] sm:$0xf0]  ;;  %v2916_v37 = vld [vmem:[#allocation2 + $0x58] sm:$0xf0]  ;;  %v4156_v38 = vld [vmem:[#allocation2 + $0x14c] sm:$0xf]  ;;  %v2915_v40 = vor.u32 %v4126_v32, %v2914_v31 }
  0x4a   :  { %662 = vmatpush.bf16.msrb.mxu3 %v3127_v48  ;;  %v3044_v39 = vld [vmem:[#allocation2 + $0x158] sm:$0xf0]  ;;  %v2898_v41 = vld [vmem:[#allocation2 + $0x28] sm:$0xf]  ;;  %v4122_v42 = vld [vmem:[#allocation2 + $0x34] sm:$0xf0]  ;;  %v3043_v44 = vor.u32 %v4158_v35, %v3042_v33  ;;  %v2919_v45 = vor.u32 %v4124_v36, %v2916_v37 }
  0x4b   :  { %624 = vmatpush.bf16.msrb.mxu0 %v2979_v56  ;;  %v3026_v43 = vld [vmem:[#allocation2 + $0x128] sm:$0xf]  ;;  %v3047_v46 = vor.u32 %v4156_v38, %v3044_v39  ;;  %v4154_v47 = vld [vmem:[#allocation2 + $0x134] sm:$0xf0]  ;;  %v4120_v48 = vld [vmem:[#allocation2 + $0x2c] sm:$0xf]  ;;  %v2899_v54 = vor.u32 %v4122_v42, %v2898_v41 }
  0x4c   :  { %637 = vmatpush.bf16.msrb.mxu1 %v3107_v57  ;;  %v2900_v50 = vld [vmem:[#allocation2 + $0x38] sm:$0xf0]  ;;  %v4152_v51 = vld [vmem:[#allocation2 + $0x12c] sm:$0xf]  ;;  %v2882_v55 = vld [vmem:[#allocation2 + $0x8] sm:$0xf]  ;;  %v3027_v56 = vor.u32 %v4154_v47, %v3026_v43 }
  0x4d   :  { %650 = vmatpush.bf16.msrb.mxu2 %v2983_v58  ;;  %v3028_v52 = vld [vmem:[#allocation2 + $0x138] sm:$0xf0]  ;;  %v2903_v57 = vor.u32 %v4120_v48, %v2900_v50  ;;  %v4118_v58 = vld [vmem:[#allocation2 + $0x14] sm:$0xf0]  ;;  %v3010_v59 = vld [vmem:[#allocation2 + $0x108] sm:$0xf] }
  0x4e   :  { %663 = vmatpush.bf16.msrb.mxu3 %v3111_v62  ;;  %v4150_v60 = vld [vmem:[#allocation2 + $0x114] sm:$0xf0]  ;;  %v3031_v61 = vor.u32 %v4152_v51, %v3028_v52  ;;  %v4116_v62 = vld [vmem:[#allocation2 + $0xc] sm:$0xf]  ;;  %v2884_v63 = vld [vmem:[#allocation2 + $0x18] sm:$0xf0] }
  0x4f   :  { %625 = vmatpush.bf16.msrb.mxu0 %v2963_v4  ;;  %v4148_v0 = vld [vmem:[#allocation2 + $0x10c] sm:$0xf]  ;;  %v3012_v1 = vld [vmem:[#allocation2 + $0x118] sm:$0xf0]  ;;  %v3186_v2 = vld [vmem:[#allocation4 + $0x70] sm:$0xf]  ;;  %v2883_v4 = vor.u32 %v4118_v58, %v2882_v55  ;;  %v3011_v7 = vor.u32 %v4150_v60, %v3010_v59  ;;  %v2887_v8 = vor.u32 %v4116_v62, %v2884_v63 }
  0x50   :  { %638 = vmatpush.bf16.msrb.mxu1 %v3091_v5  ;;  %v4194_v3 = vld [vmem:[#allocation4 + $0x74] sm:$0xf0]  ;;  %v3250_v5 = vld [vmem:[#allocation4 + $0xf0] sm:$0xf]  ;;  %v3015_v9 = vor.u32 %v4148_v0, %v3012_v1  ;;  %v3178_v13 = vld [vmem:[#allocation4 + $0x60] sm:$0xf] }
  0x51   :  { %651 = vmatpush.bf16.msrb.mxu2 %v2967_v6  ;;  %v4210_v6 = vld [vmem:[#allocation4 + $0xf4] sm:$0xf0]  ;;  %v3314_v11 = vld [vmem:[#allocation4 + $0x170] sm:$0xf]  ;;  %v4192_v14 = vld [vmem:[#allocation4 + $0x64] sm:$0xf0] }
  0x52   :  { %664 = vmatpush.bf16.msrb.mxu3 %v3095_v10  ;;  %v3187_v10 = vor.u32 %v4194_v3, %v3186_v2  ;;  %v4226_v12 = vld [vmem:[#allocation4 + $0x174] sm:$0xf0]  ;;  %v3251_v15 = vor.u32 %v4210_v6, %v3250_v5  ;;  %v3179_v19 = vor.u32 %v4192_v14, %v3178_v13  ;;  %v3306_v20 = vld [vmem:[#allocation4 + $0x160] sm:$0xf]  ;;  %v4224_v21 = vld [vmem:[#allocation4 + $0x164] sm:$0xf0] }
  0x53   :  { %626 = vmatpush.bf16.msrb.mxu0 %v2947_v16  ;;  %v3242_v16 = vld [vmem:[#allocation4 + $0xe0] sm:$0xf]  ;;  %v4190_v23 = vld [vmem:[#allocation4 + $0x54] sm:$0xf0]  ;;  %v3234_v25 = vld [vmem:[#allocation4 + $0xd0] sm:$0xf]  ;;  %v3307_v27 = vor.u32 %v4224_v21, %v3306_v20 }
  0x54   :  { %639 = vmatpush.bf16.msrb.mxu1 %v3075_v17  ;;  %v4208_v17 = vld [vmem:[#allocation4 + $0xe4] sm:$0xf0]  ;;  %v4206_v26 = vld [vmem:[#allocation4 + $0xd4] sm:$0xf0]  ;;  %v3226_v32 = vld [vmem:[#allocation4 + $0xc0] sm:$0xf] }
  0x55   :  { %652 = vmatpush.bf16.msrb.mxu2 %v2951_v18  ;;  %v3315_v18 = vor.u32 %v4226_v12, %v3314_v11  ;;  %v3243_v24 = vor.u32 %v4208_v17, %v3242_v16  ;;  %v3235_v31 = vor.u32 %v4206_v26, %v3234_v25  ;;  %v4204_v33 = vld [vmem:[#allocation4 + $0xc4] sm:$0xf0]  ;;  %v3154_v35 = vld [vmem:[#allocation4 + $0x30] sm:$0xf]  ;;  %v4202_v38 = vld [vmem:[#allocation4 + $0xb4] sm:$0xf0] }
  0x56   :  { %665 = vmatpush.bf16.msrb.mxu3 %v3079_v22  ;;  %v3170_v22 = vld [vmem:[#allocation4 + $0x50] sm:$0xf]  ;;  %v3227_v36 = vor.u32 %v4204_v33, %v3226_v32  ;;  %v3146_v39 = vld [vmem:[#allocation4 + $0x20] sm:$0xf]  ;;  %v4200_v43 = vld [vmem:[#allocation4 + $0xa4] sm:$0xf0] }
  0x57   :  { %627 = vmatpush.bf16.msrb.mxu0 %v2931_v28  ;;  %v3171_v28 = vor.u32 %v4190_v23, %v3170_v22  ;;  %v3218_v37 = vld [vmem:[#allocation4 + $0xb0] sm:$0xf]  ;;  %v3210_v42 = vld [vmem:[#allocation4 + $0xa0] sm:$0xf]  ;;  %v4198_v50 = vld [vmem:[#allocation4 + $0x94] sm:$0xf0] }
  0x58   :  { %640 = vmatpush.bf16.msrb.mxu1 %v3059_v29  ;;  %v3162_v29 = vld [vmem:[#allocation4 + $0x40] sm:$0xf]  ;;  %v3219_v41 = vor.u32 %v4202_v38, %v3218_v37  ;;  %v3211_v47 = vor.u32 %v4200_v43, %v3210_v42  ;;  %v3202_v48 = vld [vmem:[#allocation4 + $0x90] sm:$0xf]  ;;  %v4193_v55 = vld [vmem:[#allocation4 + $0x74] sm:$0xf] }
  0x59   :  { %653 = vmatpush.bf16.msrb.mxu2 %v2935_v30  ;;  %v4188_v30 = vld [vmem:[#allocation4 + $0x44] sm:$0xf0]  ;;  %v3130_v52 = vld [vmem:[#allocation4] sm:$0xf]  ;;  %v4191_v63 = vld [vmem:[#allocation4 + $0x64] sm:$0xf] }
  0x5a   :  { %666 = vmatpush.bf16.msrb.mxu3 %v3063_v34  ;;  %v3163_v34 = vor.u32 %v4188_v30, %v3162_v29  ;;  %v3194_v58 = vld [vmem:[#allocation4 + $0x80] sm:$0xf]  ;;  %v4196_v59 = vld [vmem:[#allocation4 + $0x84] sm:$0xf0]  ;;  %v3180_v0 = vld [vmem:[#allocation4 + $0x68] sm:$0xf0] }
  0x5b   :  { %628 = vmatpush.bf16.msrb.mxu0 %v2915_v40  ;;  %v4184_v40 = vld [vmem:[#allocation4 + $0x24] sm:$0xf0]  ;;  %v3195_v62 = vor.u32 %v4196_v59, %v3194_v58  ;;  %v3183_v1 = vor.u32 %v4191_v63, %v3180_v0  ;;  %v3378_v2 = vld [vmem:[#allocation4 + $0x1f0] sm:$0xf]  ;;  %v4242_v3 = vld [vmem:[#allocation4 + $0x1f4] sm:$0xf0] }
  0x5c   :  { %641 = vmatpush.bf16.msrb.mxu1 %v3043_v44  ;;  %v3147_v44 = vor.u32 %v4184_v40, %v3146_v39  ;;  %v3379_v5 = vor.u32 %v4242_v3, %v3378_v2  ;;  %v3252_v6 = vld [vmem:[#allocation4 + $0xf8] sm:$0xf0]  ;;  %v3370_v14 = vld [vmem:[#allocation4 + $0x1e0] sm:$0xf]  ;;  %v4207_v16 = vld [vmem:[#allocation4 + $0xe4] sm:$0xf] }
  0x5d   :  { %654 = vmatpush.bf16.msrb.mxu2 %v2919_v45  ;;  %v3138_v45 = vld [vmem:[#allocation4 + $0x10] sm:$0xf]  ;;  %v3172_v12 = vld [vmem:[#allocation4 + $0x58] sm:$0xf0]  ;;  %v3290_v20 = vld [vmem:[#allocation4 + $0x140] sm:$0xf] }
  0x5e   :  { %667 = vmatpush.bf16.msrb.mxu3 %v3047_v46  ;;  %v4182_v46 = vld [vmem:[#allocation4 + $0x14] sm:$0xf0]  ;;  %v4220_v21 = vld [vmem:[#allocation4 + $0x144] sm:$0xf0]  ;;  %v4187_v22 = vld [vmem:[#allocation4 + $0x44] sm:$0xf] }
  0x5f   :  { %629 = vmatpush.bf16.msrb.mxu0 %v2899_v54  ;;  %v3139_v51 = vor.u32 %v4182_v46, %v3138_v45  ;;  %v4180_v54 = vld [vmem:[#allocation4 + $0x4] sm:$0xf0]  ;;  %v3291_v23 = vor.u32 %v4220_v21, %v3290_v20  ;;  %v3362_v26 = vld [vmem:[#allocation4 + $0x1d0] sm:$0xf]  ;;  %v4205_v29 = vld [vmem:[#allocation4 + $0xd4] sm:$0xf] }
  0x60   :  { %642 = vmatpush.bf16.msrb.mxu1 %v3027_v56  ;;  %v3203_v56 = vor.u32 %v4198_v50, %v3202_v48  ;;  %v3131_v60 = vor.u32 %v4180_v54, %v3130_v52  ;;  %v3236_v30 = vld [vmem:[#allocation4 + $0xd8] sm:$0xf0]  ;;  %v3282_v32 = vld [vmem:[#allocation4 + $0x130] sm:$0xf]  ;;  %v4218_v33 = vld [vmem:[#allocation4 + $0x134] sm:$0xf0] }
  0x61   :  { %655 = vmatpush.bf16.msrb.mxu2 %v2903_v57  ;;  %v3188_v57 = vld [vmem:[#allocation4 + $0x78] sm:$0xf0]  ;;  %v3354_v37 = vld [vmem:[#allocation4 + $0x1c0] sm:$0xf]  ;;  %v4236_v38 = vld [vmem:[#allocation4 + $0x1c4] sm:$0xf0] }
  0x62   :  { %668 = vmatpush.bf16.msrb.mxu3 %v3031_v61  ;;  %v3191_v61 = vor.u32 %v4193_v55, %v3188_v57  ;;  %v3355_v39 = vor.u32 %v4236_v38, %v3354_v37  ;;  %v3228_v40 = vld [vmem:[#allocation4 + $0xc8] sm:$0xf0]  ;;  %v3274_v42 = vld [vmem:[#allocation4 + $0x120] sm:$0xf]  ;;  %v4216_v43 = vld [vmem:[#allocation4 + $0x124] sm:$0xf0] }
  0x63   :  { %630 = vmatpush.bf16.msrb.mxu0 %v2883_v4  ;;  %v4209_v4 = vld [vmem:[#allocation4 + $0xf4] sm:$0xf]  ;;  %v3275_v45 = vor.u32 %v4216_v43, %v3274_v42  ;;  %v3148_v46 = vld [vmem:[#allocation4 + $0x28] sm:$0xf0]  ;;  %v3346_v48 = vld [vmem:[#allocation4 + $0x1b0] sm:$0xf] }
  0x64   :  { %643 = vmatpush.bf16.msrb.mxu1 %v3011_v7  ;;  %v3255_v7 = vor.u32 %v4209_v4, %v3252_v6  ;;  %v4234_v50 = vld [vmem:[#allocation4 + $0x1b4] sm:$0xf0]  ;;  %v3220_v54 = vld [vmem:[#allocation4 + $0xb8] sm:$0xf0]  ;;  %v3266_v55 = vld [vmem:[#allocation4 + $0x110] sm:$0xf] }
  0x65   :  { %656 = vmatpush.bf16.msrb.mxu2 %v2887_v8  ;;  %v3298_v8 = vld [vmem:[#allocation4 + $0x150] sm:$0xf]  ;;  %v3347_v52 = vor.u32 %v4234_v50, %v3346_v48  ;;  %v4181_v59 = vld [vmem:[#allocation4 + $0x14] sm:$0xf]  ;;  %v4232_v63 = vld [vmem:[#allocation4 + $0x1a4] sm:$0xf0] }
  0x66   :  { %669 = vmatpush.bf16.msrb.mxu3 %v3015_v9  ;;  %631 = vmatmul.bf16.vlgmr.msrb.gmra.mxu0 %v4796_v49  ;;  %v4222_v9 = vld [vmem:[#allocation4 + $0x154] sm:$0xf0]  ;;  %v4199_v0 = vld [vmem:[#allocation4 + $0xa4] sm:$0xf]  ;;  %v3258_v4 = vld [vmem:[#allocation4 + $0x100] sm:$0xf] }
  0x67   :  { %1073 = vmatpush.bf16.msra.mxu0 %v3187_v10  ;;  %644 = vmatmul.bf16.vlgmr.msrb.gmra.mxu1 %v4798_v53  ;;  %v4189_v10 = vld [vmem:[#allocation4 + $0x54] sm:$0xf]  ;;  %v3299_v11 = vor.u32 %v4222_v9, %v3298_v8  ;;  %v4179_v6 = vld [vmem:[#allocation4 + $0x4] sm:$0xf]  ;;  %v3132_v8 = vld [vmem:[#allocation4 + $0x8] sm:$0xf0] }
  0x68   :  { %1086 = vmatpush.bf16.msra.mxu1 %v3251_v15  ;;  %657 = vmatmul.bf16.vlgmr.msrb.gmra.mxu2 %v4796_v49  ;;  %v4186_v49 = vld [vmem:[#allocation4 + $0x34] sm:$0xf0]  ;;  %v3175_v13 = vor.u32 %v4189_v10, %v3172_v12  ;;  %v4240_v15 = vld [vmem:[#allocation4 + $0x1e4] sm:$0xf0]  ;;  %v4225_v9 = vld [vmem:[#allocation4 + $0x174] sm:$0xf] }
  0x69   :  { %670 = vmatmul.bf16.vlgmr.msrb.gmra.mxu3 %v4798_v53  ;;  %1099 = vmatpush.bf16.msra.mxu2 %v3315_v18  ;;  %v3155_v53 = vor.u32 %v4186_v49, %v3154_v35  ;;  %v3371_v17 = vor.u32 %v4240_v15, %v3370_v14  ;;  %v3244_v18 = vld [vmem:[#allocation4 + $0xe8] sm:$0xf0]  ;;  %v3283_v35 = vor.u32 %v4218_v33, %v3282_v32  ;;  %v3156_v49 = vld [vmem:[#allocation4 + $0x38] sm:$0xf0]  ;;  %v4230_v14 = vld [vmem:[#allocation4 + $0x194] sm:$0xf0] }
  0x6a   :  { %1112 = vmatpush.bf16.msra.mxu3 %v3379_v5  ;;  %v4212_v5 = vld [vmem:[#allocation4 + $0x104] sm:$0xf0]  ;;  %v3316_v10 = vld [vmem:[#allocation4 + $0x178] sm:$0xf0]  ;;  %v4197_v15 = vld [vmem:[#allocation4 + $0x94] sm:$0xf] }
  0x6b   :  { %1074 = vmatpush.bf16.msra.mxu0 %v3179_v19  ;;  %v3247_v19 = vor.u32 %v4207_v16, %v3244_v18  ;;  %v3319_v12 = vor.u32 %v4225_v9, %v3316_v10  ;;  %v4223_v20 = vld [vmem:[#allocation4 + $0x164] sm:$0xf]  ;;  %v3308_v21 = vld [vmem:[#allocation4 + $0x168] sm:$0xf0]  ;;  %v4221_v33 = vld [vmem:[#allocation4 + $0x154] sm:$0xf] }
  0x6c   :  { %1087 = vmatpush.bf16.msra.mxu1 %v3243_v24  ;;  %v3164_v24 = vld [vmem:[#allocation4 + $0x48] sm:$0xf0]  ;;  %v4217_v50 = vld [vmem:[#allocation4 + $0x134] sm:$0xf]  ;;  %v4231_v9 = vld [vmem:[#allocation4 + $0x1a4] sm:$0xf] }
  0x6d   :  { %1100 = vmatpush.bf16.msra.mxu2 %v3307_v27  ;;  %v3167_v25 = vor.u32 %v4187_v22, %v3164_v24  ;;  %v4238_v27 = vld [vmem:[#allocation4 + $0x1d4] sm:$0xf0]  ;;  %v3322_v22 = vld [vmem:[#allocation4 + $0x180] sm:$0xf]  ;;  %v4228_v24 = vld [vmem:[#allocation4 + $0x184] sm:$0xf0] }
  0x6e   :  { %1113 = vmatpush.bf16.msra.mxu3 %v3371_v17  ;;  %v3204_v17 = vld [vmem:[#allocation4 + $0x98] sm:$0xf0]  ;;  %v3372_v37 = vld [vmem:[#allocation4 + $0x1e8] sm:$0xf0]  ;;  %vm1514_vm2 = vcmask 130048   ;;  %vm1633_vm3 = vcmask 392192  }
  0x6f   :  { %1075 = vmatpush.bf16.msra.mxu0 %v3171_v28  ;;  %v3363_v28 = vor.u32 %v4238_v27, %v3362_v26  ;;  %v3207_v18 = vor.u32 %v4197_v15, %v3204_v17  ;;  %v3196_v26 = vld [vmem:[#allocation4 + $0x88] sm:$0xf0]  ;;  %v3323_v27 = vor.u32 %v4228_v24, %v3322_v22 }
  0x70   :  { %1088 = vmatpush.bf16.msra.mxu1 %v3235_v31  ;;  %v3239_v31 = vor.u32 %v4205_v29, %v3236_v30  ;;  %v4241_v29 = vld [vmem:[#allocation4 + $0x1f4] sm:$0xf]  ;;  %v3380_v30 = vld [vmem:[#allocation4 + $0x1f8] sm:$0xf0]  ;;  %v3324_v24 = vld [vmem:[#allocation4 + $0x188] sm:$0xf0] }
  0x71   :  { %1101 = vmatpush.bf16.msra.mxu2 %v3299_v11  ;;  %v3135_v11 = vor.u32 %v4179_v6, %v3132_v8  ;;  %v3383_v32 = vor.u32 %v4241_v29, %v3380_v30  ;;  %v3268_v8 = vld [vmem:[#allocation4 + $0x118] sm:$0xf0] }
  0x72   :  { %1114 = vmatpush.bf16.msra.mxu3 %v3363_v28 }
  0x73   :  { %1076 = vmatpush.bf16.msra.mxu0 %v3163_v34  ;;  %v4185_v34 = vld [vmem:[#allocation4 + $0x34] sm:$0xf] }
  0x74   :  { %1089 = vmatpush.bf16.msra.mxu1 %v3227_v36  ;;  %v3159_v36 = vor.u32 %v4185_v34, %v3156_v49  ;;  %v3300_v34 = vld [vmem:[#allocation4 + $0x158] sm:$0xf0] }
  0x75   :  { %1102 = vmatpush.bf16.msra.mxu2 %v3291_v23  ;;  %v3311_v23 = vor.u32 %v4223_v20, %v3308_v21  ;;  %v3332_v20 = vld [vmem:[#allocation4 + $0x198] sm:$0xf0] }
  0x76   :  { %1115 = vmatpush.bf16.msra.mxu3 %v3355_v39 }
  0x77   :  { %1077 = vmatpush.bf16.msra.mxu0 %v3155_v53  ;;  %v4203_v53 = vld [vmem:[#allocation4 + $0xc4] sm:$0xf] }
  0x78   :  { %1090 = vmatpush.bf16.msra.mxu1 %v3219_v41  ;;  %v3231_v41 = vor.u32 %v4203_v53, %v3228_v40  ;;  %v4219_v40 = vld [vmem:[#allocation4 + $0x144] sm:$0xf] }
  0x79   :  { %1103 = vmatpush.bf16.msra.mxu2 %v3283_v35  ;;  %v3303_v35 = vor.u32 %v4221_v33, %v3300_v34 }
  0x7a   :  { %1116 = vmatpush.bf16.msra.mxu3 %v3347_v52 }
  0x7b   :  { %1078 = vmatpush.bf16.msra.mxu0 %v3147_v44  ;;  %v4183_v44 = vld [vmem:[#allocation4 + $0x24] sm:$0xf] }
  0x7c   :  { %1091 = vmatpush.bf16.msra.mxu1 %v3211_v47  ;;  %v3151_v47 = vor.u32 %v4183_v44, %v3148_v46  ;;  %v3364_v46 = vld [vmem:[#allocation4 + $0x1d8] sm:$0xf0] }
  0x7d   :  { %1104 = vmatpush.bf16.msra.mxu2 %v3275_v45  ;;  %v4237_v45 = vld [vmem:[#allocation4 + $0x1d4] sm:$0xf] }
  0x7e   :  { %v3367_v48 = vor.u32 %v4237_v45, %v3364_v46  ;;  %v4246_v45 = vld [vmem:[%s4967_s3 + $0x18] sm:$0xff] }
  0x7f   :  { %1079 = vmatpush.bf16.msra.mxu0 %v3139_v51  ;;  %v4201_v51 = vld [vmem:[#allocation4 + $0xb4] sm:$0xf]  ;;  %v4258_v46 = vld [vmem:[%s4967_s3 + $0x78] sm:$0xff] }
  0x80   :  { %1092 = vmatpush.bf16.msra.mxu1 %v3203_v56  ;;  %v4214_v56 = vld [vmem:[#allocation4 + $0x114] sm:$0xf0]  ;;  %v3223_v57 = vor.u32 %v4201_v51, %v3220_v54  ;;  %v3284_v51 = vld [vmem:[#allocation4 + $0x138] sm:$0xf0] }
  0x81   :  { %v3267_v58 = vor.u32 %v4214_v56, %v3266_v55  ;;  %v3287_v55 = vor.u32 %v4217_v50, %v3284_v51  ;;  %v4257_v50 = vld [vmem:[%s4967_s3 + $0x70] sm:$0xff] }
  0x83   :  { %1080 = vmatpush.bf16.msra.mxu0 %v3131_v60  ;;  %v3140_v60 = vld [vmem:[#allocation4 + $0x18] sm:$0xf0]  ;;  %1105 = vmatpush.bf16.msra.mxu2 %v3267_v58 }
  0x84   :  { %1093 = vmatpush.bf16.msra.mxu1 %v3195_v62  ;;  %v3143_v62 = vor.u32 %v4181_v59, %v3140_v60  ;;  %v4235_v59 = vld [vmem:[#allocation4 + $0x1c4] sm:$0xf]  ;;  %v3356_v60 = vld [vmem:[#allocation4 + $0x1c8] sm:$0xf0] }
  0x87   :  { %1125 = vmatpush.bf16.msrb.mxu0 %v3191_v61  ;;  %v3338_v61 = vld [vmem:[#allocation4 + $0x1a0] sm:$0xf] }
  0x88   :  { %1138 = vmatpush.bf16.msrb.mxu1 %v3255_v7  ;;  %v3339_v2 = vor.u32 %v4232_v63, %v3338_v61  ;;  %v3259_v7 = vor.u32 %v4212_v5, %v3258_v4  ;;  %v4233_v4 = vld [vmem:[#allocation4 + $0x1b4] sm:$0xf]  ;;  %v3348_v5 = vld [vmem:[#allocation4 + $0x1b8] sm:$0xf0] }
  0x89   :  { %v3351_v6 = vor.u32 %v4233_v4, %v3348_v5  ;;  %v4266_v5 = vld [vmem:[%s4968_s4 + $0x38] sm:$0xff] }
  0x8a   :  { %1117 = vmatpush.bf16.msra.mxu3 %v3339_v2  ;;  %1106 = vmatpush.bf16.msra.mxu2 %v3259_v7  ;;  %v4213_v7 = vld [vmem:[#allocation4 + $0x114] sm:$0xf] }
  0x8b   :  { %1126 = vmatpush.bf16.msrb.mxu0 %v3183_v1  ;;  %v3212_v1 = vld [vmem:[#allocation4 + $0xa8] sm:$0xf0] }
  0x8c   :  { %1139 = vmatpush.bf16.msrb.mxu1 %v3247_v19  ;;  %v3215_v3 = vor.u32 %v4199_v0, %v3212_v1  ;;  %v4808_v19 = vld [vmem:[#allocation13] sm:$0xf]  ;;  %v4215_v0 = vld [vmem:[#allocation4 + $0x124] sm:$0xf]  ;;  %v3276_v1 = vld [vmem:[#allocation4 + $0x128] sm:$0xf0] }
  0x8d   :  { %v244_v44 = vperm.slane %v4808_v19, 1  ;;  %v3279_v2 = vor.u32 %v4215_v0, %v3276_v1  ;;  %v4252_v0 = vld [vmem:[%s4967_s3 + $0x48] sm:$0xff]  ;;  %v743_v1 = vld [vmem:[#allocation13 + $0x4] sm:$0x3] }
  0x8e   :  { %1151 = vmatpush.bf16.msrb.mxu2 %v3319_v12  ;;  %v3340_v12 = vld [vmem:[#allocation4 + $0x1a8] sm:$0xf0] }
  0x8f   :  { %1127 = vmatpush.bf16.msrb.mxu0 %v3175_v13  ;;  %v3330_v13 = vld [vmem:[#allocation4 + $0x190] sm:$0xf] }
  0x90   :  { %1140 = vmatpush.bf16.msrb.mxu1 %v3239_v31  ;;  %v3331_v16 = vor.u32 %v4230_v14, %v3330_v13  ;;  %v243_v31 = vperm.slane %v4808_v19, 0  ;;  %v4211_v13 = vld [vmem:[#allocation4 + $0x104] sm:$0xf]  ;;  %v3260_v14 = vld [vmem:[#allocation4 + $0x108] sm:$0xf0] }
  0x91   :  { %v3263_v21 = vor.u32 %v4211_v13, %v3260_v14 }
  0x92   :  { %1118 = vmatpush.bf16.msra.mxu3 %v3331_v16  ;;  %1152 = vmatpush.bf16.msrb.mxu2 %v3311_v23  ;;  %v3343_v16 = vor.u32 %v4231_v9, %v3340_v12  ;;  %v4227_v23 = vld [vmem:[#allocation4 + $0x184] sm:$0xf] }
  0x93   :  { %1128 = vmatpush.bf16.msrb.mxu0 %v3167_v25  ;;  %v4195_v25 = vld [vmem:[#allocation4 + $0x84] sm:$0xf] }
  0x94   :  { %1141 = vmatpush.bf16.msrb.mxu1 %v3231_v41  ;;  %v3199_v28 = vor.u32 %v4195_v25, %v3196_v26  ;;  %v3292_v41 = vld [vmem:[#allocation4 + $0x148] sm:$0xf0]  ;;  %v3327_v25 = vor.u32 %v4227_v23, %v3324_v24  ;;  %v245_v26 = vperm.slane %v4808_v19, 2 }
  0x95   :  { %v3295_v43 = vor.u32 %v4219_v40, %v3292_v41 }
  0x96   :  { %1119 = vmatpush.bf16.msra.mxu3 %v3323_v27  ;;  %1153 = vmatpush.bf16.msrb.mxu2 %v3303_v35 }
  0x97   :  { %1129 = vmatpush.bf16.msrb.mxu0 %v3159_v36  ;;  %v4239_v36 = vld [vmem:[#allocation4 + $0x1e4] sm:$0xf] }
  0x98   :  { %1142 = vmatpush.bf16.msrb.mxu1 %v3223_v57  ;;  %v3375_v39 = vor.u32 %v4239_v36, %v3372_v37 }
  0x9a   :  { %1164 = vmatpush.bf16.msrb.mxu3 %v3383_v32  ;;  %1154 = vmatpush.bf16.msrb.mxu2 %v3295_v43  ;;  %v4248_v43 = vld [vmem:[%s4967_s3 + $0x28] sm:$0xff] }
  0x9b   :  { %1130 = vmatpush.bf16.msrb.mxu0 %v3151_v47 }
  0x9c   :  { %1143 = vmatpush.bf16.msrb.mxu1 %v3215_v3 }
  0x9e   :  { %1165 = vmatpush.bf16.msrb.mxu3 %v3375_v39  ;;  %1155 = vmatpush.bf16.msrb.mxu2 %v3287_v55  ;;  %v4256_v55 = vld [vmem:[%s4967_s3 + $0x68] sm:$0xff] }
  0x9f   :  { %1131 = vmatpush.bf16.msrb.mxu0 %v3143_v62  ;;  %v3359_v62 = vor.u32 %v4235_v59, %v3356_v60  ;;  %v4254_v60 = vld [vmem:[%s4967_s3 + $0x58] sm:$0xff] }
  0xa0   :  { %1144 = vmatpush.bf16.msrb.mxu1 %v3207_v18  ;;  %v4229_v18 = vld [vmem:[#allocation4 + $0x194] sm:$0xf] }
  0xa1   :  { %v3335_v22 = vor.u32 %v4229_v18, %v3332_v20 }
  0xa2   :  { %1166 = vmatpush.bf16.msrb.mxu3 %v3367_v48  ;;  %1156 = vmatpush.bf16.msrb.mxu2 %v3279_v2  ;;  %v4245_v48 = vld [vmem:[%s4967_s3 + $0x10] sm:$0xff]  ;;  %v4251_v2 = vld [vmem:[%s4967_s3 + $0x40] sm:$0xff] }
  0xa3   :  { %1132 = vmatpush.bf16.msrb.mxu0 %v3135_v11  ;;  %v3271_v11 = vor.u32 %v4213_v7, %v3268_v8  ;;  %v4265_v8 = vld [vmem:[%s4968_s4 + $0x30] sm:$0xff] }
  0xa4   :  { %1145 = vmatpush.bf16.msrb.mxu1 %v3199_v28 }
  0xa6   :  { %1167 = vmatpush.bf16.msrb.mxu3 %v3359_v62  ;;  %1157 = vmatpush.bf16.msrb.mxu2 %v3271_v11 }
  0xaa   :  { %1168 = vmatpush.bf16.msrb.mxu3 %v3351_v6  ;;  %1158 = vmatpush.bf16.msrb.mxu2 %v3263_v21 }
  0xae   :  { %1169 = vmatpush.bf16.msrb.mxu3 %v3343_v16  ;;  %v750_v16 = vperm.slane %v743_v1, 1 }
  0xb2   :  { %1170 = vmatpush.bf16.msrb.mxu3 %v3335_v22 }
  0xb6   :  { %1171 = vmatpush.bf16.msrb.mxu3 %v3327_v25 }
  0xc3   :  { %v580_v49 = vpop.f32.mrf.mxu0 }
  0xc4   :  { %v581_v38 = vadd.f32 %v580_v49, %v243_v31  ;;  %v593_v53 = vpop.f32.mrf.mxu1  ;;  %v246_v31 = vperm.slane %v4808_v19, 3  ;;  %v4250_v19 = vld [vmem:[%s4967_s3 + $0x38] sm:$0xff] }
  0xc6   :  { %v594_v42 = vadd.f32 %v593_v53, %v581_v38 }
  0xc8   :  { %v675_v47 = vmax.f32 %v594_v42, 0.0  ;;  %v4249_v42 = vld [vmem:[%s4967_s3 + $0x30] sm:$0xff] }
  0xca   :  { %v744_v52 = vpack.c.bf16 %v675_v47, %v675_v47 }
  0xcb   :  { %v606_v54 = vpop.f32.mrf.mxu2  ;;  %v582_v58 = vpop.f32.mrf.mxu0 }
  0xcc   :  { %v607_v56 = vadd.f32 %v606_v54, %v244_v44  ;;  %v619_v57 = vpop.f32.mrf.mxu3  ;;  %1081 = vmatmul.bf16.vlgmr.msra.gmra.mxu0 %v744_v52  ;;  %v595_v61 = vpop.f32.mrf.mxu1  ;;  %v4247_v44 = vld [vmem:[%s4967_s3 + $0x20] sm:$0xff]  ;;  %v4244_v54 = vld [vmem:[%s4967_s3 + $0x8] sm:$0xff] }
  0xcd   :  { %1313 = vmatpush.bf16.msra.mxu0 %v4250_v19  ;;  %v4253_v61 = vld [vmem:[%s4967_s3 + $0x50] sm:$0xff] }
  0xce   :  { %v620_v63 = vadd.f32 %v619_v57, %v607_v56  ;;  %v4243_v56 = vld [vmem:[%s4967_s3] sm:$0xff] }
  0xcf   :  { %v4255_v57 = vld [vmem:[%s4967_s3 + $0x60] sm:$0xff] }
  0xd0   :  { %v676_v3 = vmax.f32 %v620_v63, 0.0 }
  0xd1   :  { %1314 = vmatpush.bf16.msra.mxu0 %v4249_v42 }
  0xd2   :  { %v745_v10 = vpack.c.bf16 %v676_v3, %v676_v3  ;;  %v749_v3 = vperm.slane %v743_v1, 0 }
  0xd3   :  { %v608_v15 = vpop.f32.mrf.mxu2 }
  0xd4   :  { %1094 = vmatmul.bf16.vlgmr.msra.gmra.mxu1 %v745_v10  ;;  %v621_v17 = vpop.f32.mrf.mxu3 }
  0xd5   :  { %1315 = vmatpush.bf16.msra.mxu0 %v4248_v43  ;;  %1326 = vmatpush.bf16.msra.mxu1 %v4258_v46  ;;  %v4272_v46 = vld [vmem:[%s4970_s6 + $0x8] sm:$0xff] }
  0xd9   :  { %1316 = vmatpush.bf16.msra.mxu0 %v4247_v44  ;;  %1327 = vmatpush.bf16.msra.mxu1 %v4257_v50 }
  0xdc   :  { %1133 = vmatmul.bf16.vlgmr.msrb.gmra.mxu0 %v744_v52 }
  0xdd   :  { %1317 = vmatpush.bf16.msra.mxu0 %v4246_v45  ;;  %1328 = vmatpush.bf16.msra.mxu1 %v4256_v55  ;;  %v4267_v45 = vld [vmem:[%s4969_s5] sm:$0xff] }
  0xde   :  { %v4273_v55 = vld [vmem:[%s4971_s7] sm:$0xff] }
  0xe1   :  { %1318 = vmatpush.bf16.msra.mxu0 %v4245_v48  ;;  %1329 = vmatpush.bf16.msra.mxu1 %v4255_v57 }
  0xe3   :  { %v632_v27 = vpop.f32.mrf.mxu0 }
  0xe4   :  { %v633_v28 = vadd.f32 %v632_v27, %v245_v26  ;;  %v645_v29 = vpop.f32.mrf.mxu1  ;;  %1146 = vmatmul.bf16.vlgmr.msrb.gmra.mxu1 %v745_v10 }
  0xe5   :  { %1319 = vmatpush.bf16.msra.mxu0 %v4244_v54  ;;  %1330 = vmatpush.bf16.msra.mxu1 %v4254_v60 }
  0xe6   :  { %v646_v30 = vadd.f32 %v645_v29, %v633_v28  ;;  %v4264_v29 = vld [vmem:[%s4968_s4 + $0x28] sm:$0xff] }
  0xe8   :  { %v677_v32 = vmax.f32 %v646_v30, 0.0  ;;  %v4263_v30 = vld [vmem:[%s4968_s4 + $0x20] sm:$0xff] }
  0xe9   :  { %1320 = vmatpush.bf16.msra.mxu0 %v4243_v56  ;;  %1331 = vmatpush.bf16.msra.mxu1 %v4253_v61  ;;  %v1518_v56 = vld [vmem:[#allocation13 + $0x7] sm:$0x3] }
  0xea   :  { %v746_v33 = vpack.c.bf16 %v677_v32, %v677_v32  ;;  %v4261_v32 = vld [vmem:[%s4968_s4 + $0x10] sm:$0xff]  ;;  %v1521_v57 = vperm.slane %v1518_v56, 0 }
  0xeb   :  { %v658_v34 = vpop.f32.mrf.mxu2  ;;  %v634_v36 = vpop.f32.mrf.mxu0 }
  0xec   :  { %v659_v35 = vadd.f32 %v658_v34, %v246_v31  ;;  %v671_v49 = vpop.f32.mrf.mxu3  ;;  %v647_v37 = vpop.f32.mrf.mxu1  ;;  %1107 = vmatmul.bf16.vlgmr.msra.gmra.mxu2 %v746_v33  ;;  %v4262_v31 = vld [vmem:[%s4968_s4 + $0x18] sm:$0xff]  ;;  %v4259_v34 = vld [vmem:[%s4968_s4] sm:$0xff]  ;;  %v4269_v36 = vld [vmem:[%s4969_s5 + $0x10] sm:$0xff]  ;;  %1529 = vrot.lane.b32.xlu1 %v1521_v57, %s4662_s26 }
  0xed   :  { %1332 = vmatpush.bf16.msra.mxu1 %v4252_v0  ;;  %1409 = vmatpush.bf16.msra.mxu2 %v4266_v5  ;;  %v4268_v37 = vld [vmem:[%s4969_s5 + $0x8] sm:$0xff]  ;;  %v1522_v0 = vperm.slane %v1518_v56, 1  ;;  %v4284_v56 = vld [vmem:[#allocation9 + $0x24] sm:$0xf]  ;;  %v3557_v57 = vld [vmem:[#allocation9 + $0x28] sm:$0xf0] }
  0xee   :  { %v672_v38 = vadd.f32 %v671_v49, %v659_v35  ;;  %v4270_v35 = vld [vmem:[%s4969_s5 + $0x18] sm:$0xff]  ;;  %v4442_v49 = vld [vmem:[#allocation13 + $0x7] ss:$0 sm:$0xff]  ;;  %s4668_s5 = smov 32  }
  0xef   :  { %1456 = vrot.lane.b32.xlu0 %v4442_v49, %s4658_s2 }
  0xf0   :  { %v678_v53 = vmax.f32 %v672_v38, 0.0 }
  0xf1   :  { %1333 = vmatpush.bf16.msra.mxu1 %v4251_v2  ;;  %1410 = vmatpush.bf16.msra.mxu2 %v4265_v8  ;;  %v4443_v8 = vld [vmem:[#allocation13 + $0x8] ss:$0 sm:$0xff] }
  0xf2   :  { %v747_v39 = vpack.c.bf16 %v678_v53, %v678_v53 }
  0xf3   :  { %v660_v40 = vpop.f32.mrf.mxu2 }
  0xf4   :  { %v673_v41 = vpop.f32.mrf.mxu3  ;;  %1120 = vmatmul.bf16.vlgmr.msra.gmra.mxu3 %v747_v39  ;;  %1531 = vrot.lane.b32.xlu1 %v1522_v0, %s4662_s26  ;;  %s4669_s26 = smov 112  }
  0xf5   :  { %1411 = vmatpush.bf16.msra.mxu2 %v4264_v29  ;;  %1467 = vmatpush.bf16.msra.mxu3 %v4270_v35  ;;  %v3597_v29 = vld [vmem:[#allocation9 + $0x78] sm:$0xf0] }
  0xf6   :  { %1545 = vmatpush.bf16.msrb.mxu1 %v4273_v55  ;;  %1572 = vrot.lane.b32.xlu2 %v4443_v8, %s4669_s26  ;;  %v4285_v55 = vld [vmem:[#allocation9 + $0x24] sm:$0xf0]  ;;  %v3539_v8 = vld [vmem:[#allocation9] sm:$0xf] }
  0xf7   :  { %1494 = vrot.lane.b32.xlu0 %v4442_v49, %s4668_s5 }
  0xf9   :  { %1412 = vmatpush.bf16.msra.mxu2 %v4263_v30  ;;  %1468 = vmatpush.bf16.msra.mxu3 %v4269_v36  ;;  %v3579_v36 = vld [vmem:[#allocation9 + $0x50] sm:$0xf] }
  0xfc   :  { %1159 = vmatmul.bf16.vlgmr.msrb.gmra.mxu2 %v746_v33  ;;  %v4260_v33 = vld [vmem:[%s4968_s4 + $0x8] sm:$0xff] }
  0xfd   :  { %1413 = vmatpush.bf16.msra.mxu2 %v4262_v31  ;;  %1469 = vmatpush.bf16.msra.mxu3 %v4268_v37  ;;  %v3587_v31 = vld [vmem:[#allocation9 + $0x60] sm:$0xf]  ;;  %v4291_v37 = vld [vmem:[#allocation9 + $0x54] sm:$0xf0] }
 0x101   :  { %1414 = vmatpush.bf16.msra.mxu2 %v4261_v32  ;;  %1470 = vmatpush.bf16.msra.mxu3 %v4267_v45  ;;  %v4293_v32 = vld [vmem:[#allocation9 + $0x64] sm:$0xf0] }
 0x102   :  { %v3588_v35 = vor.u32 %v4293_v32, %v3587_v31  ;;  %v4326_v31 = vld [vmem:[#allocation10 + $0xec] sm:$0xf0]  ;;  %v4324_v32 = vld [vmem:[#allocation10 + $0xe4] sm:$0xf] }
 0x104   :  { %1172 = vmatmul.bf16.vlgmr.msrb.gmra.mxu3 %v747_v39  ;;  %v4441_v39 = vld [vmem:[#allocation13 + $0x6] ss:$0 sm:$0xff] }
 0x105   :  { %1415 = vmatpush.bf16.msra.mxu2 %v4260_v33  ;;  %1507 = vmatpush.bf16.msrb.mxu3 %v4272_v46  ;;  %v4292_v33 = vld [vmem:[#allocation9 + $0x64] sm:$0xf]  ;;  %v3563_v46 = vld [vmem:[#allocation9 + $0x30] sm:$0xf] }
 0x109   :  { %1416 = vmatpush.bf16.msra.mxu2 %v4259_v34  ;;  %v3589_v34 = vld [vmem:[#allocation9 + $0x68] sm:$0xf0] }
 0x149   :  { %v1082_v47 = vpop.f32.mrf.mxu0 }
 0x14a   :  { %v1083_v6 = vadd.f32 %v1082_v47, %v749_v3  ;;  %v4271_v47 = vld [vmem:[%s4970_s6] sm:$0xff] }
 0x14b   :  { %1508 = vmatpush.bf16.msrb.mxu3 %v4271_v47  ;;  %v4287_v47 = vld [vmem:[#allocation9 + $0x34] sm:$0xf0] }
 0x151   :  { %v1095_v51 = vpop.f32.mrf.mxu1  ;;  %v1084_v52 = vpop.f32.mrf.mxu0 }
 0x152   :  { %v1096_v9 = vadd.f32 %v1095_v51, %v1083_v6  ;;  %v4275_v6 = vld [vmem:[#allocation6 + $0x8] sm:$0xff] }
 0x159   :  { %v1097_v58 = vpop.f32.mrf.mxu1  ;;  %v1134_v59 = vpop.f32.mrf.mxu0 }
 0x15a   :  { %v1135_v20 = vadd.f32 %v1134_v59, %v750_v16 }
 0x161   :  { %v1147_v62 = vpop.f32.mrf.mxu1  ;;  %v1136_v63 = vpop.f32.mrf.mxu0 }
 0x162   :  { %v1148_v21 = vadd.f32 %v1147_v62, %v1135_v20  ;;  %v1457_v58 = vpop.permute.xlu0 %1456 }
 0x169   :  { %v1149_v4 = vpop.f32.mrf.mxu1 }
 0x16a   :  { %v1495_v1 = vpop.permute.xlu0 %1494 }
 0x16f   :  { %v1108_v7 = vpop.f32.mrf.mxu2 }
 0x170   :  { %v1109_v10 = vadd.f32 %v1108_v7, %v1096_v9  ;;  %v4274_v7 = vld [vmem:[#allocation6] sm:$0xff]  ;;  %v4279_v9 = vld [vmem:[#allocation7 + $0x18] sm:$0xff] }
 0x171   :  { %1643 = vmatpush.bf16.msrb.mxu2 %v4279_v9  ;;  %v4281_v9 = vld [vmem:[#allocation9 + $0x4] sm:$0xf0] }
 0x177   :  { %v1121_v11 = vpop.f32.mrf.mxu3  ;;  %v1110_v13 = vpop.f32.mrf.mxu2 }
 0x178   :  { %v1122_v12 = vadd.f32 %v1121_v11, %v1109_v10  ;;  %v4278_v10 = vld [vmem:[#allocation7 + $0x10] sm:$0xff]  ;;  %v4277_v11 = vld [vmem:[#allocation7 + $0x8] sm:$0xff] }
 0x179   :  { %1644 = vmatpush.bf16.msrb.mxu2 %v4278_v10  ;;  %v4280_v10 = vld [vmem:[#allocation9 + $0x4] sm:$0xf] }
 0x17a   :  { %v1177_v14 = vmax.f32 %v1122_v12, 0.0  ;;  %v1530_v12 = vpop.permute.xlu1 %1529 }
 0x17c   :  { %v1212_v15 = vpack.c.bf16 %v1177_v14, %v1177_v14 }
 0x17d   :  { %1645 = vmatpush.bf16.msrb.mxu2 %v4277_v11  ;;  %v3540_v11 = vor.u32 %v4281_v9, %v3539_v8  ;;  %v4310_v8 = vld [vmem:[#allocation10 + $0x6c] sm:$0xf0]  ;;  %v4308_v9 = vld [vmem:[#allocation10 + $0x64] sm:$0xf] }
 0x17e   :  { %1321 = vmatmul.bf16.vlgmr.msra.gmra.mxu0 %v1212_v15 }
 0x17f   :  { %v1123_v17 = vpop.f32.mrf.mxu3  ;;  %v1160_v18 = vpop.f32.mrf.mxu2 }
 0x180   :  { %v1161_v22 = vadd.f32 %v1160_v18, %v1148_v21  ;;  %v4276_v21 = vld [vmem:[#allocation7] sm:$0xff] }
 0x181   :  { %1646 = vmatpush.bf16.msrb.mxu2 %v4276_v21 }
 0x182   :  { %v1532_v13 = vpop.permute.xlu1 %1531 }
 0x183   :  { %v1533_v14 = vsel %vm1514_vm2, %v1530_v12, %v1532_v13  ;;  %v3541_v12 = vld [vmem:[#allocation9 + $0x8] sm:$0xf0] }
 0x184   :  { %v3544_v13 = vor.u32 %v4280_v10, %v3541_v12  ;;  %v3653_v10 = vld [vmem:[#allocation10 + $0x70] sm:$0xf0]  ;;  %v3763_v12 = vld [vmem:[#allocation10 + $0x140] sm:$0xf] }
 0x187   :  { %v1173_v23 = vpop.f32.mrf.mxu3  ;;  %v1162_v25 = vpop.f32.mrf.mxu2 }
 0x188   :  { %v1174_v24 = vadd.f32 %v1173_v23, %v1161_v22  ;;  %v1600_v22 = vld [vmem:[#allocation13 + $0x8] sm:$0x3]  ;;  %v3595_v23 = vld [vmem:[#allocation9 + $0x70] sm:$0xf] }
 0x189   :  { %v1604_v25 = vperm.slane %v1600_v22, 1 }
 0x18a   :  { %v1178_v26 = vmax.f32 %v1174_v24, 0.0  ;;  %v4295_v24 = vld [vmem:[#allocation9 + $0x74] sm:$0xf0] }
 0x18c   :  { %v1213_v27 = vpack.c.bf16 %v1178_v26, %v1178_v26  ;;  %v1603_v26 = vperm.slane %v1600_v22, 0  ;;  %v4356_v22 = vld [vmem:[#allocation10 + $0x1e4] sm:$0xf] }
 0x18e   :  { %1334 = vmatmul.bf16.vlgmr.msra.gmra.mxu1 %v1213_v27  ;;  %v3596_v27 = vor.u32 %v4295_v24, %v3595_v23  ;;  %v3845_v23 = vld [vmem:[#allocation10 + $0x1f0] sm:$0xf0]  ;;  %v3827_v24 = vld [vmem:[#allocation10 + $0x1c0] sm:$0xf] }
 0x18f   :  { %v1175_v28 = vpop.f32.mrf.mxu3  ;;  %1584 = vmatpush.bf16.msra.mxu1 %v4275_v6  ;;  %v3549_v6 = vld [vmem:[#allocation9 + $0x18] sm:$0xf0] }
 0x190   :  { %v4294_v28 = vld [vmem:[#allocation9 + $0x74] sm:$0xf] }
 0x191   :  { %v3600_v30 = vor.u32 %v4294_v28, %v3597_v29  ;;  %v3829_v28 = vld [vmem:[#allocation10 + $0x1d0] sm:$0xf0]  ;;  %v3715_v29 = vld [vmem:[#allocation10 + $0xe0] sm:$0xf] }
 0x193   :  { %1585 = vmatpush.bf16.msra.mxu1 %v4274_v7  ;;  %1778 = vmatpush.bf16.msrb.mxu0 %v3600_v30 }
 0x1fb   :  { %v1322_v38 = vpop.f32.mrf.mxu0 }
 0x1fc   :  { %v1323_v40 = vadd.f32 %v4441_v39, %v1322_v38  ;;  %v4290_v38 = vld [vmem:[#allocation9 + $0x54] sm:$0xf]  ;;  %v3580_v39 = vor.u32 %v4291_v37, %v3579_v36  ;;  %v3811_v36 = vld [vmem:[#allocation10 + $0x1a0] sm:$0xf]  ;;  %v4350_v37 = vld [vmem:[#allocation10 + $0x1ac] sm:$0xf0] }
 0x203   :  { %v1324_v53 = vpop.f32.mrf.mxu0 }
 0x204   :  { %v3581_v53 = vld [vmem:[#allocation9 + $0x58] sm:$0xf0] }
 0x20b   :  { %v1335_v41 = vpop.f32.mrf.mxu1 }
 0x20c   :  { %v1336_v19 = vadd.f32 %v1335_v41, %v1323_v40  ;;  %v3584_v40 = vor.u32 %v4290_v38, %v3581_v53  ;;  %v3571_v41 = vld [vmem:[#allocation9 + $0x40] sm:$0xf]  ;;  %v4348_v38 = vld [vmem:[#allocation10 + $0x1a4] sm:$0xf]  ;;  %v3813_v53 = vld [vmem:[#allocation10 + $0x1b0] sm:$0xf0] }
 0x20e   :  { %v1339_v42 = vmax.f32 %v1336_v19, 0.0  ;;  %v4289_v19 = vld [vmem:[#allocation9 + $0x44] sm:$0xf0] }
 0x210   :  { %v1357_v43 = vpack.c.bf16 %v1339_v42, %v1339_v42  ;;  %v4288_v42 = vld [vmem:[#allocation9 + $0x44] sm:$0xf] }
 0x212   :  { %1417 = vmatmul.bf16.vlgmr.msra.gmra.mxu2 %v1357_v43  ;;  %v3573_v43 = vld [vmem:[#allocation9 + $0x48] sm:$0xf0] }
 0x213   :  { %v1337_v44 = vpop.f32.mrf.mxu1  ;;  %v3576_v45 = vor.u32 %v4288_v42, %v3573_v43  ;;  %v3701_v42 = vld [vmem:[#allocation10 + $0xd0] sm:$0xf0]  ;;  %v3812_v43 = vor.u32 %v4350_v37, %v3811_v36  ;;  %v4330_v36 = vld [vmem:[#allocation10 + $0x10c] sm:$0xf0]  ;;  %v4328_v37 = vld [vmem:[#allocation10 + $0x104] sm:$0xf] }
 0x214   :  { %v3572_v44 = vor.u32 %v4289_v19, %v3571_v41  ;;  %v4320_v19 = vld [vmem:[#allocation10 + $0xc4] sm:$0xf] }
 0x295   :  { %v1418_v48 = vpop.f32.mrf.mxu2 }
 0x296   :  { %v1419_v50 = vadd.f32 %v4442_v49, %v1418_v48  ;;  %v3592_v49 = vor.u32 %v4292_v33, %v3589_v34  ;;  %v4286_v48 = vld [vmem:[#allocation9 + $0x34] sm:$0xf] }
 0x297   :  { %v3717_v33 = vld [vmem:[#allocation10 + $0xf0] sm:$0xf0] }
 0x298   :  { %v1422_v51 = vmax.f32 %v1419_v50, 0.0  ;;  %1779 = vmatpush.bf16.msrb.mxu0 %v3592_v49  ;;  %v3565_v50 = vld [vmem:[#allocation9 + $0x38] sm:$0xf0]  ;;  %v3720_v49 = vor.u32 %v4324_v32, %v3717_v33 }
 0x29a   :  { %v1431_v52 = vpack.c.bf16 %v1422_v51, %v1422_v51  ;;  %v3564_v51 = vor.u32 %v4287_v47, %v3563_v46  ;;  %v4346_v46 = vld [vmem:[#allocation10 + $0x18c] sm:$0xf0]  ;;  %v3816_v47 = vor.u32 %v4348_v38, %v3813_v53  ;;  %v3733_v38 = vld [vmem:[#allocation10 + $0x110] sm:$0xf0] }
 0x29c   :  { %3496 = vmatmul.msk.bf16.vlgmr.msra.gmra.mxu3 %vm1459_vm0, %v1431_v52  ;;  %1780 = vmatpush.bf16.msrb.mxu0 %v3584_v40  ;;  %v3568_v52 = vor.u32 %v4286_v48, %v3565_v50  ;;  %v4322_v40 = vld [vmem:[#allocation10 + $0xcc] sm:$0xf0]  ;;  %v3683_v48 = vld [vmem:[#allocation10 + $0xa0] sm:$0xf] }
 0x29d   :  { %v1420_v54 = vpop.f32.mrf.mxu2  ;;  %1765 = vmatpush.bf16.msra.mxu3 %v3596_v27  ;;  %v4352_v27 = vld [vmem:[#allocation10 + $0x1c4] sm:$0xf]  ;;  %v4318_v50 = vld [vmem:[#allocation10 + $0xac] sm:$0xf0] }
 0x29e   :  { %v3555_v54 = vld [vmem:[#allocation9 + $0x20] sm:$0xf]  ;;  %v3832_v34 = vor.u32 %v4352_v27, %v3829_v28  ;;  %v4334_v28 = vld [vmem:[#allocation10 + $0x12c] sm:$0xf0] }
 0x29f   :  { %v3747_v27 = vld [vmem:[#allocation10 + $0x120] sm:$0xf] }
 0x2a0   :  { %1781 = vmatpush.bf16.msrb.mxu0 %v3576_v45  ;;  %v3795_v45 = vld [vmem:[#allocation10 + $0x180] sm:$0xf] }
 0x2a1   :  { %1766 = vmatpush.bf16.msra.mxu3 %v3588_v35  ;;  %v3716_v35 = vor.u32 %v4326_v31, %v3715_v29  ;;  %v3749_v31 = vld [vmem:[#allocation10 + $0x130] sm:$0xf0] }
 0x2a4   :  { %1782 = vmatpush.bf16.msrb.mxu0 %v3568_v52  ;;  %v4344_v52 = vld [vmem:[#allocation10 + $0x184] sm:$0xf] }
 0x2a5   :  { %1767 = vmatpush.bf16.msra.mxu3 %v3580_v39  ;;  %v3699_v39 = vld [vmem:[#allocation10 + $0xc0] sm:$0xf] }
 0x2a6   :  { %v3700_v41 = vor.u32 %v4322_v40, %v3699_v39  ;;  %v3851_v40 = vld [vmem:[#allocation10 + $0x1e8] sm:$0xf] }
 0x2a9   :  { %1768 = vmatpush.bf16.msra.mxu3 %v3572_v44  ;;  %v3704_v44 = vor.u32 %v4320_v19, %v3701_v42  ;;  %v4302_v19 = vld [vmem:[#allocation10 + $0x2c] sm:$0xf0]  ;;  %v4359_v42 = vld [vmem:[#allocation10 + $0x1f4] sm:$0xf0] }
 0x2ad   :  { %1769 = vmatpush.bf16.msra.mxu3 %v3564_v51  ;;  %v4316_v51 = vld [vmem:[#allocation10 + $0xa4] sm:$0xf] }
 0x31f   :  { %v1472_v59 = vpop.f32.mrf.mxu3 }
 0x320   :  { %v1473_v60 = vadd.f32 %v1472_v59, %v1457_v58  ;;  %v3556_v58 = vor.u32 %v4285_v55, %v3555_v54  ;;  %v3560_v59 = vor.u32 %v4284_v56, %v3557_v57  ;;  %v3797_v54 = vld [vmem:[#allocation10 + $0x190] sm:$0xf0]  ;;  %v3684_v56 = vor.u32 %v4318_v50, %v3683_v48 }
 0x321   :  { %v3685_v55 = vld [vmem:[#allocation10 + $0xb0] sm:$0xf0] }
 0x322   :  { %v1476_v61 = vmax.f32 %v1473_v60, 0.0  ;;  %v1573_v60 = vpop.permute.xlu2 %1572  ;;  %1770 = vmatpush.bf16.msra.mxu3 %v3556_v58  ;;  %1783 = vmatpush.bf16.msrb.mxu0 %v3560_v59  ;;  %v3688_v57 = vor.u32 %v4316_v51, %v3685_v55  ;;  %v3667_v58 = vld [vmem:[#allocation10 + $0x80] sm:$0xf]  ;;  %v3796_v59 = vor.u32 %v4346_v46, %v3795_v45  ;;  %v4300_v46 = vld [vmem:[#allocation10 + $0x24] sm:$0xf]  ;;  %v3852_v55 = vor.u32 %v4359_v42, %v3851_v40 }
 0x323   :  { %v3835_v51 = vld [vmem:[#allocation10 + $0x1c8] sm:$0xf]  ;;  %v4313_v42 = vld [vmem:[#allocation10 + $0x8c] sm:$0xf] }
 0x324   :  { %v1481_v62 = vpack.c.bf16 %v1476_v61, %v1476_v61 }
 0x326   :  { %3505 = vmatmul.msk.bf16.vlgmr.msrb.gmra.mxu3 %vm1497_vm1, %v1481_v62 }
 0x327   :  { %v1474_v63 = vpop.f32.mrf.mxu3 }
 0x3a9   :  { %v1510_v2 = vpop.f32.mrf.mxu3 }
 0x3aa   :  { %v1511_v3 = vadd.f32 %v1510_v2, %v1495_v1  ;;  %v3547_v2 = vld [vmem:[#allocation9 + $0x10] sm:$0xf] }
 0x3ac   :  { %1515 = vst.msk [vmem:[%s4979_s15] sm:$0xff] %vm1514_vm2, %v1511_v3  ;;  %v1519_v4 = vpack.c.bf16 %v1511_v3, %v1511_v3  ;;  %s4670_s15 = smov 48   ;;  %v4283_v3 = vld [vmem:[#allocation9 + $0x14] sm:$0xf0] }
 0x3ad   :  { %1631 = vrot.lane.b32.xlu0 %v1604_v25, %s4670_s15  ;;  %1629 = vrot.lane.b32.xlu2 %v1603_v26, %s4670_s15  ;;  %v4354_v25 = vld [vmem:[#allocation10 + $0x1cc] sm:$0xf0]  ;;  %v3848_v26 = vor.u32 %v4356_v22, %v3845_v23 }
 0x3ae   :  { %3510 = vmatmul.msk.bf16.vlgmr.msrb.gmra.mxu1 %vm1514_vm2, %v1519_v4  ;;  %v4282_v4 = vld [vmem:[#allocation9 + $0x14] sm:$0xf]  ;;  %v3828_v30 = vor.u32 %v4354_v25, %v3827_v24  ;;  %v4306_v23 = vld [vmem:[#allocation10 + $0x4c] sm:$0xf0]  ;;  %v4304_v24 = vld [vmem:[#allocation10 + $0x44] sm:$0xf] }
 0x3af   :  { %v3552_v7 = vor.u32 %v4282_v4, %v3549_v6  ;;  %2204 = vmatpush.bf16.msrb.mxu1 %v3716_v35  ;;  %v3651_v6 = vld [vmem:[#allocation10 + $0x60] sm:$0xf]  ;;  %v3637_v25 = vld [vmem:[#allocation10 + $0x50] sm:$0xf0] }
 0x3b0   :  { %v3640_v33 = vor.u32 %v4304_v24, %v3637_v25  ;;  %v3803_v25 = vld [vmem:[#allocation10 + $0x188] sm:$0xf] }
 0x3b1   :  { %v1512_v5 = vpop.f32.mrf.mxu3  ;;  %1784 = vmatpush.bf16.msrb.mxu0 %v3552_v7 }
 0x3b2   :  { %v3548_v5 = vor.u32 %v4283_v3, %v3547_v2  ;;  %v4340_v2 = vld [vmem:[#allocation10 + $0x164] sm:$0xf]  ;;  %v3781_v3 = vld [vmem:[#allocation10 + $0x170] sm:$0xf0] }
 0x3b3   :  { %2205 = vmatpush.bf16.msrb.mxu1 %v3700_v41  ;;  %v3619_v41 = vld [vmem:[#allocation10 + $0x20] sm:$0xf] }
 0x3b4   :  { %1771 = vmatpush.bf16.msra.mxu3 %v3548_v5  ;;  %v3620_v50 = vor.u32 %v4302_v19, %v3619_v41  ;;  %v3675_v41 = vld [vmem:[#allocation10 + $0x88] sm:$0xf]  ;;  %v4315_v19 = vld [vmem:[#allocation10 + $0x94] sm:$0xf0] }
 0x3b5   :  { %1785 = vmatpush.bf16.msrb.mxu0 %v3544_v13  ;;  %v4338_v13 = vld [vmem:[#allocation10 + $0x14c] sm:$0xf0] }
 0x3b6   :  { %v3764_v22 = vor.u32 %v4338_v13, %v3763_v12  ;;  %v3819_v12 = vld [vmem:[#allocation10 + $0x1a8] sm:$0xf]  ;;  %v4351_v13 = vld [vmem:[#allocation10 + $0x1b4] sm:$0xf0] }
 0x3b7   :  { %2206 = vmatpush.bf16.msrb.mxu1 %v3684_v56  ;;  %v4355_v56 = vld [vmem:[#allocation10 + $0x1d4] sm:$0xf0] }
 0x3b8   :  { %1772 = vmatpush.bf16.msra.mxu3 %v3540_v11  ;;  %v3784_v11 = vor.u32 %v4340_v2, %v3781_v3  ;;  %v3605_v2 = vld [vmem:[#allocation10 + $0x10] sm:$0xf0] }
 0x3b9   :  { %2243 = vmatpush.bf16.msra.mxu0 %v3848_v26 }
 0x3bc   :  { %2230 = vmatpush.bf16.msrb.mxu3 %v3720_v49  ;;  %v3748_v49 = vor.u32 %v4334_v28, %v3747_v27  ;;  %v4345_v27 = vld [vmem:[#allocation10 + $0x18c] sm:$0xf] }
 0x3bd   :  { %2244 = vmatpush.bf16.msra.mxu0 %v3832_v34  ;;  %v3731_v34 = vld [vmem:[#allocation10 + $0x100] sm:$0xf] }
 0x3be   :  { %v3732_v48 = vor.u32 %v4330_v36, %v3731_v34  ;;  %v3787_v36 = vld [vmem:[#allocation10 + $0x168] sm:$0xf] }
 0x3c0   :  { %2231 = vmatpush.bf16.msrb.mxu3 %v3704_v44  ;;  %v3853_v44 = vld [vmem:[#allocation10 + $0x1f8] sm:$0xf0] }
 0x3c1   :  { %2245 = vmatpush.bf16.msra.mxu0 %v3816_v47  ;;  %v3621_v47 = vld [vmem:[#allocation10 + $0x30] sm:$0xf0] }
 0x3c4   :  { %2232 = vmatpush.bf16.msrb.mxu3 %v3688_v57  ;;  %v3603_v57 = vld [vmem:[#allocation10] sm:$0xf] }
 0x42b   :  { %v1547_v15 = vpop.f32.mrf.mxu1 }
 0x42c   :  { %v1548_v16 = vadd.f32 %v1547_v15, %v1533_v14  ;;  %v1669_v14 = vld [vmem:[#allocation13 + $0x9] sm:$0x7]  ;;  %v3843_v15 = vld [vmem:[#allocation10 + $0x1e0] sm:$0xf] }
 0x42e   :  { %v1551_v17 = vmax.f32 %v1548_v16, 0.0  ;;  %v4358_v16 = vld [vmem:[#allocation10 + $0x1ec] sm:$0xf0] }
 0x42f   :  { %v3844_v21 = vor.u32 %v4358_v16, %v3843_v15  ;;  %v3765_v15 = vld [vmem:[#allocation10 + $0x150] sm:$0xf0]  ;;  %v1630_v16 = vpop.permute.xlu2 %1629 }
 0x430   :  { %v1557_v18 = vpack.c.bf16 %v1551_v17, %v1551_v17  ;;  %v1673_v17 = vperm.slane %v1669_v14, 1 }
 0x431   :  { %2217 = vmatpush.bf16.msra.mxu2 %v3844_v21  ;;  %v3635_v21 = vld [vmem:[#allocation10 + $0x40] sm:$0xf] }
 0x432   :  { %3519 = vmatmul.msk.bf16.vlgmr.msra.gmra.mxu1 %vm1497_vm1, %v1557_v18  ;;  %v1672_v18 = vperm.slane %v1669_v14, 0  ;;  %1757 = vrot.lane.b32.xlu1 %v1673_v17, %s4670_s15  ;;  %v1632_v17 = vpop.permute.xlu0 %1631  ;;  %v3636_v32 = vor.u32 %v4306_v23, %v3635_v21  ;;  %v4321_v21 = vld [vmem:[#allocation10 + $0xcc] sm:$0xf]  ;;  %v3709_v23 = vld [vmem:[#allocation10 + $0xd8] sm:$0xf0] }
 0x433   :  { %v1549_v20 = vpop.f32.mrf.mxu1  ;;  %v1634_v29 = vsel %vm1633_vm3, %v1630_v16, %v1632_v17  ;;  %v3821_v16 = vld [vmem:[#allocation10 + $0x1b8] sm:$0xf0]  ;;  %v3712_v24 = vor.u32 %v4321_v21, %v3709_v23 }
 0x434   :  { %v1674_v20 = vperm.slane %v1669_v14, 2  ;;  %1755 = vrot.lane.b32.xlu0 %v1672_v18, %s4670_s15  ;;  %v4336_v14 = vld [vmem:[#allocation10 + $0x144] sm:$0xf]  ;;  %v3652_v18 = vor.u32 %v4310_v8, %v3651_v6  ;;  %v3725_v6 = vld [vmem:[#allocation10 + $0xf8] sm:$0xf0] }
 0x435   :  { %2218 = vmatpush.bf16.msra.mxu2 %v3828_v30  ;;  %v3768_v26 = vor.u32 %v4336_v14, %v3765_v15  ;;  %v4332_v30 = vld [vmem:[#allocation10 + $0x124] sm:$0xf]  ;;  %v4349_v14 = vld [vmem:[#allocation10 + $0x1ac] sm:$0xf]  ;;  %v3820_v15 = vor.u32 %v4351_v13, %v3819_v12  ;;  %v3629_v21 = vld [vmem:[#allocation10 + $0x38] sm:$0xf0] }
 0x436   :  { %1759 = vrot.lane.b32.xlu2 %v1674_v20, %s4670_s15  ;;  %v3656_v20 = vor.u32 %v4308_v9, %v3653_v10  ;;  %v3752_v39 = vor.u32 %v4332_v30, %v3749_v31  ;;  %v3824_v17 = vor.u32 %v4349_v14, %v3821_v16  ;;  %v3691_v31 = vld [vmem:[#allocation10 + $0xa8] sm:$0xf]  ;;  %v4329_v12 = vld [vmem:[#allocation10 + $0x10c] sm:$0xf]  ;;  %v3741_v14 = vld [vmem:[#allocation10 + $0x118] sm:$0xf0] }
 0x437   :  { %v4303_v16 = vld [vmem:[#allocation10 + $0x34] sm:$0xf0] }
 0x439   :  { %2219 = vmatpush.bf16.msra.mxu2 %v3812_v43  ;;  %v4357_v43 = vld [vmem:[#allocation10 + $0x1ec] sm:$0xf] }
 0x43d   :  { %2220 = vmatpush.bf16.msra.mxu2 %v3796_v59  ;;  %v3856_v59 = vor.u32 %v4357_v43, %v3853_v44  ;;  %v3676_v43 = vor.u32 %v4315_v19, %v3675_v41  ;;  %v3677_v44 = vld [vmem:[#allocation10 + $0x98] sm:$0xf0]  ;;  %v3971_v19 = vld [vmem:[#allocation12 + $0xe0] sm:$0xf] }
 0x4af   :  { %v1587_v61 = vpop.f32.mrf.mxu1 }
 0x4b0   :  { %v1588_v62 = vadd.f32 %v1587_v61, %v1573_v60  ;;  %v4314_v60 = vld [vmem:[#allocation10 + $0x8c] sm:$0xf0]  ;;  %v4312_v61 = vld [vmem:[#allocation10 + $0x84] sm:$0xf] }
 0x4b1   :  { %v3668_v4 = vor.u32 %v4314_v60, %v3667_v58  ;;  %v4298_v58 = vld [vmem:[#allocation10 + $0xc] sm:$0xf0]  ;;  %v3624_v60 = vor.u32 %v4300_v46, %v3621_v47  ;;  %v3771_v46 = vld [vmem:[#allocation10 + $0x148] sm:$0xf]  ;;  %v4339_v47 = vld [vmem:[#allocation10 + $0x154] sm:$0xf0] }
 0x4b2   :  { %v1591_v63 = vmax.f32 %v1588_v62, 0.0  ;;  %v3669_v62 = vld [vmem:[#allocation10 + $0x90] sm:$0xf0] }
 0x4b3   :  { %v3672_v5 = vor.u32 %v4312_v61, %v3669_v62  ;;  %2207 = vmatpush.bf16.msrb.mxu1 %v3668_v4  ;;  %v4353_v61 = vld [vmem:[#allocation10 + $0x1cc] sm:$0xf]  ;;  %v3723_v62 = vld [vmem:[#allocation10 + $0xe8] sm:$0xf]  ;;  %v3604_v4 = vor.u32 %v4298_v58, %v3603_v57  ;;  %v3661_v58 = vld [vmem:[#allocation10 + $0x78] sm:$0xf0] }
 0x4b4   :  { %v1601_v0 = vpack.c.bf16 %v1591_v63, %v1591_v63  ;;  %v3800_v63 = vor.u32 %v4344_v52, %v3797_v54  ;;  %v3736_v54 = vor.u32 %v4328_v37, %v3733_v38  ;;  %v4343_v37 = vld [vmem:[#allocation10 + $0x174] sm:$0xf0]  ;;  %v4341_v38 = vld [vmem:[#allocation10 + $0x16c] sm:$0xf] }
 0x4b5   :  { %2233 = vmatpush.bf16.msrb.mxu3 %v3672_v5  ;;  %v4325_v5 = vld [vmem:[#allocation10 + $0xec] sm:$0xf] }
 0x4b6   :  { %3536 = vmatmul.msk.bf16.vlgmr.msrb.gmra.mxu2 %vm1459_vm0, %v1601_v0  ;;  %v3779_v0 = vld [vmem:[#allocation10 + $0x160] sm:$0xf]  ;;  %2246 = vmatpush.bf16.msra.mxu0 %v3800_v63  ;;  %v4327_v63 = vld [vmem:[#allocation10 + $0xf4] sm:$0xf0] }
 0x4b7   :  { %v1589_v1 = vpop.f32.mrf.mxu1  ;;  %2208 = vmatpush.bf16.msrb.mxu1 %v3652_v18  ;;  %v3724_v8 = vor.u32 %v4327_v63, %v3723_v62  ;;  %v3707_v18 = vld [vmem:[#allocation10 + $0xc8] sm:$0xf]  ;;  %v4335_v63 = vld [vmem:[#allocation10 + $0x134] sm:$0xf0] }
 0x4b8   :  { %v4342_v1 = vld [vmem:[#allocation10 + $0x16c] sm:$0xf0]  ;;  %v3755_v62 = vld [vmem:[#allocation10 + $0x128] sm:$0xf] }
 0x4b9   :  { %v3780_v7 = vor.u32 %v4342_v1, %v3779_v0  ;;  %2234 = vmatpush.bf16.msrb.mxu3 %v3656_v20  ;;  %v3837_v0 = vld [vmem:[#allocation10 + $0x1d8] sm:$0xf0]  ;;  %v4296_v1 = vld [vmem:[#allocation10 + $0x4] sm:$0xf]  ;;  %v4323_v20 = vld [vmem:[#allocation10 + $0xd4] sm:$0xf0] }
 0x4ba   :  { %2247 = vmatpush.bf16.msra.mxu0 %v3784_v11  ;;  %v3840_v9 = vor.u32 %v4353_v61, %v3837_v0  ;;  %v3608_v10 = vor.u32 %v4296_v1, %v3605_v2  ;;  %v3728_v11 = vor.u32 %v4325_v5, %v3725_v6  ;;  %v3756_v0 = vor.u32 %v4335_v63, %v3755_v62  ;;  %v4333_v1 = vld [vmem:[#allocation10 + $0x12c] sm:$0xf]  ;;  %v3757_v2 = vld [vmem:[#allocation10 + $0x138] sm:$0xf0]  ;;  %v4307_v5 = vld [vmem:[#allocation10 + $0x54] sm:$0xf0] }
 0x4bb   :  { %2221 = vmatpush.bf16.msra.mxu2 %v3780_v7  ;;  %2209 = vmatpush.bf16.msrb.mxu1 %v3636_v32  ;;  %v3836_v7 = vor.u32 %v4355_v56, %v3835_v51  ;;  %v4319_v32 = vld [vmem:[#allocation10 + $0xb4] sm:$0xf0]  ;;  %v3773_v51 = vld [vmem:[#allocation10 + $0x158] sm:$0xf0]  ;;  %v4309_v56 = vld [vmem:[#allocation10 + $0x6c] sm:$0xf] }
 0x4bc   :  { %v3692_v34 = vor.u32 %v4319_v32, %v3691_v31  ;;  %v4305_v6 = vld [vmem:[#allocation10 + $0x4c] sm:$0xf]  ;;  %v1758_v31 = vpop.permute.xlu1 %1757 }
 0x4bd   :  { %2235 = vmatpush.bf16.msrb.mxu3 %v3640_v33  ;;  %v4317_v33 = vld [vmem:[#allocation10 + $0xac] sm:$0xf] }
 0x4be   :  { %2248 = vmatpush.bf16.msra.mxu0 %v3768_v26  ;;  %v4347_v26 = vld [vmem:[#allocation10 + $0x194] sm:$0xf0] }
 0x4bf   :  { %2222 = vmatpush.bf16.msra.mxu2 %v3764_v22  ;;  %2210 = vmatpush.bf16.msrb.mxu1 %v3620_v50  ;;  %v3708_v22 = vor.u32 %v4323_v20, %v3707_v18  ;;  %v3804_v28 = vor.u32 %v4347_v26, %v3803_v25  ;;  %v3772_v50 = vor.u32 %v4339_v47, %v3771_v46  ;;  %v4301_v20 = vld [vmem:[#allocation10 + $0x2c] sm:$0xf]  ;;  %v4299_v25 = vld [vmem:[#allocation10 + $0x14] sm:$0xf0]  ;;  %v4107_v47 = vld [vmem:[#allocation12 + $0x1f0] sm:$0xf] }
 0x4c0   :  { %v4297_v26 = vld [vmem:[#allocation10 + $0xc] sm:$0xf]  ;;  %v4375_v46 = vld [vmem:[#allocation12 + $0x74] sm:$0xf0] }
 0x4c1   :  { %2236 = vmatpush.bf16.msrb.mxu3 %v3624_v60  ;;  %v3664_v60 = vor.u32 %v4309_v56, %v3661_v58  ;;  %v3963_v58 = vld [vmem:[#allocation12 + $0xd0] sm:$0xf] }
 0x4c2   :  { %2249 = vmatpush.bf16.msra.mxu0 %v3752_v39  ;;  %v3789_v39 = vld [vmem:[#allocation10 + $0x178] sm:$0xf0] }
 0x4c3   :  { %2223 = vmatpush.bf16.msra.mxu2 %v3748_v49  ;;  %2211 = vmatpush.bf16.msrb.mxu1 %v3604_v4  ;;  %v3792_v40 = vor.u32 %v4341_v38, %v3789_v39  ;;  %v3760_v4 = vor.u32 %v4333_v1, %v3757_v2  ;;  %v4035_v1 = vld [vmem:[#allocation12 + $0x160] sm:$0xf]  ;;  %v4405_v2 = vld [vmem:[#allocation12 + $0x164] sm:$0xf0] }
 0x4c5   :  { %2237 = vmatpush.bf16.msrb.mxu3 %v3608_v10  ;;  %v3739_v10 = vld [vmem:[#allocation10 + $0x108] sm:$0xf] }
 0x4c6   :  { %2250 = vmatpush.bf16.msra.mxu0 %v3736_v54  ;;  %v3659_v54 = vld [vmem:[#allocation10 + $0x68] sm:$0xf] }
 0x4c7   :  { %2224 = vmatpush.bf16.msra.mxu2 %v3732_v48  ;;  %2256 = vmatpush.bf16.msra.mxu1 %v3724_v8  ;;  %v4337_v48 = vld [vmem:[#allocation10 + $0x14c] sm:$0xf] }
 0x4cb   :  { %2269 = vmatpush.bf16.msrb.mxu2 %v3852_v55  ;;  %2257 = vmatpush.bf16.msra.mxu1 %v3708_v22  ;;  %v4311_v55 = vld [vmem:[#allocation10 + $0x74] sm:$0xf0]  ;;  %v3632_v22 = vor.u32 %v4301_v20, %v3629_v21  ;;  %v4369_v20 = vld [vmem:[#allocation12 + $0x44] sm:$0xf0] }
 0x4cc   :  { %v3660_v57 = vor.u32 %v4311_v55, %v3659_v54 }
 0x4cf   :  { %2270 = vmatpush.bf16.msrb.mxu2 %v3836_v7  ;;  %2258 = vmatpush.bf16.msra.mxu1 %v3692_v34  ;;  %v3645_v7 = vld [vmem:[#allocation10 + $0x58] sm:$0xf0] }
 0x4d3   :  { %2271 = vmatpush.bf16.msrb.mxu2 %v3820_v15  ;;  %2259 = vmatpush.bf16.msra.mxu1 %v3676_v43  ;;  %v3627_v15 = vld [vmem:[#allocation10 + $0x28] sm:$0xf] }
 0x4d4   :  { %v3628_v18 = vor.u32 %v4303_v16, %v3627_v15  ;;  %v4383_v15 = vld [vmem:[#allocation12 + $0xb4] sm:$0xf0] }
 0x4d7   :  { %2272 = vmatpush.bf16.msrb.mxu2 %v3804_v28  ;;  %2260 = vmatpush.bf16.msra.mxu1 %v3660_v57  ;;  %v3613_v28 = vld [vmem:[#allocation10 + $0x18] sm:$0xf0] }
 0x539   :  { %v1648_v35 = vpop.f32.mrf.mxu2 }
 0x53a   :  { %v1649_v53 = vadd.f32 %v1648_v35, %v1634_v29  ;;  %v3805_v29 = vld [vmem:[#allocation10 + $0x198] sm:$0xf0] }
 0x53b   :  { %v3808_v30 = vor.u32 %v4345_v27, %v3805_v29  ;;  %v3693_v35 = vld [vmem:[#allocation10 + $0xb8] sm:$0xf0]  ;;  %v3616_v29 = vor.u32 %v4297_v26, %v3613_v28  ;;  %v3875_v26 = vld [vmem:[#allocation12 + $0x20] sm:$0xf] }
 0x53c   :  { %v1652_v45 = vmax.f32 %v1649_v53, 0.0  ;;  %v3696_v49 = vor.u32 %v4317_v33, %v3693_v35  ;;  %v3788_v53 = vor.u32 %v4343_v37, %v3787_v36  ;;  %v3979_v36 = vld [vmem:[#allocation12 + $0xf0] sm:$0xf]  ;;  %v4391_v37 = vld [vmem:[#allocation12 + $0xf4] sm:$0xf0] }
 0x53e   :  { %v1670_v52 = vpack.c.bf16 %v1652_v45, %v1652_v45  ;;  %2273 = vmatpush.bf16.msrb.mxu2 %v3788_v53  ;;  %v3680_v45 = vor.u32 %v4313_v42, %v3677_v44  ;;  %v1756_v53 = vpop.permute.xlu0 %1755  ;;  %v4389_v42 = vld [vmem:[#allocation12 + $0xe4] sm:$0xf0] }
 0x53f   :  { %v1761_v43 = vsel %vm1633_vm3, %v1756_v53, %v1758_v31  ;;  %v3972_v55 = vor.u32 %v4389_v42, %v3971_v19  ;;  %v4374_v19 = vld [vmem:[#allocation12 + $0x74] sm:$0xf]  ;;  %v3917_v42 = vld [vmem:[#allocation12 + $0x78] sm:$0xf0] }
 0x540   :  { %1773 = vmatmul.bf16.vlgmr.msra.gmra.mxu3 %v1670_v52  ;;  %1786 = vmatmul.bf16.vlgmr.msrb.gmra.mxu0 %v1670_v52  ;;  %v3776_v52 = vor.u32 %v4337_v48, %v3773_v51  ;;  %v4407_v51 = vld [vmem:[#allocation12 + $0x174] sm:$0xf0] }
 0x541   :  { %v1650_v3 = vpop.f32.mrf.mxu2  ;;  %2295 = vmatpush.bf16.msrb.mxu0 %v3856_v59  ;;  %2282 = vmatpush.bf16.msra.mxu3 %v3728_v11  ;;  %v4926_v59 = vld [vmem:[#allocation13 + $0xb] sm:$0x1f]  ;;  %v4331_v11 = vld [vmem:[#allocation10 + $0x114] sm:$0xf0] }
 0x542   :  { %2274 = vmatpush.bf16.msrb.mxu2 %v3772_v50  ;;  %v1862_v61 = vperm.slane %v4926_v59, 1  ;;  %v3643_v3 = vld [vmem:[#allocation10 + $0x48] sm:$0xf]  ;;  %v3740_v13 = vor.u32 %v4331_v11, %v3739_v10  ;;  %v1861_v23 = vperm.slane %v4926_v59, 0  ;;  %v1864_v32 = vperm.slane %v4926_v59, 3 }
 0x543   :  { %v3644_v8 = vor.u32 %v4307_v5, %v3643_v3  ;;  %v1863_v33 = vperm.slane %v4926_v59, 2  ;;  %v1865_v39 = vperm.slane %v4926_v59, 4  ;;  %v4043_v50 = vld [vmem:[#allocation12 + $0x170] sm:$0xf]  ;;  %v4387_v59 = vld [vmem:[#allocation12 + $0xd4] sm:$0xf0] }
 0x544   :  { %2188 = vrot.lane.b32.xlu1 %v1862_v61, %s4670_s15  ;;  %2192 = vrot.lane.b32.xlu0 %v1864_v32, %s4670_s15  ;;  %v3907_v61 = vld [vmem:[#allocation12 + $0x60] sm:$0xf]  ;;  %v4044_v62 = vor.u32 %v4407_v51, %v4043_v50  ;;  %v3964_v3 = vor.u32 %v4387_v59, %v3963_v58  ;;  %v4385_v5 = vld [vmem:[#allocation12 + $0xc4] sm:$0xf0]  ;;  %v4371_v10 = vld [vmem:[#allocation12 + $0x54] sm:$0xf0] }
 0x545   :  { %2296 = vmatpush.bf16.msrb.mxu0 %v3840_v9  ;;  %2283 = vmatpush.bf16.msra.mxu3 %v3712_v24  ;;  %v3648_v9 = vor.u32 %v4305_v6, %v3645_v7  ;;  %v3611_v24 = vld [vmem:[#allocation10 + $0x8] sm:$0xf]  ;;  %v4027_v11 = vld [vmem:[#allocation12 + $0x150] sm:$0xf]  ;;  %v3939_v32 = vld [vmem:[#allocation12 + $0xa0] sm:$0xf] }
 0x546   :  { %2275 = vmatpush.bf16.msrb.mxu2 %v3756_v0  ;;  %2261 = vmatpush.bf16.msra.mxu1 %v3644_v8  ;;  %v3612_v27 = vor.u32 %v4299_v25, %v3611_v24  ;;  %v4373_v0 = vld [vmem:[#allocation12 + $0x64] sm:$0xf0]  ;;  %v3899_v8 = vld [vmem:[#allocation12 + $0x50] sm:$0xf]  ;;  %v4367_v24 = vld [vmem:[#allocation12 + $0x34] sm:$0xf0] }
 0x547   :  { %2190 = vrot.lane.b32.xlu2 %v1863_v33, %s4670_s15  ;;  %v3908_v7 = vor.u32 %v4373_v0, %v3907_v61  ;;  %v3900_v16 = vor.u32 %v4371_v10, %v3899_v8  ;;  %v4381_v33 = vld [vmem:[#allocation12 + $0xa4] sm:$0xf0]  ;;  %v4011_v50 = vld [vmem:[#allocation12 + $0x130] sm:$0xf]  ;;  %v4399_v51 = vld [vmem:[#allocation12 + $0x134] sm:$0xf0] }
 0x548   :  { %v4377_v59 = vld [vmem:[#allocation12 + $0x84] sm:$0xf0]  ;;  %v4390_v0 = vld [vmem:[#allocation12 + $0xf4] sm:$0xf]  ;;  %v4415_v10 = vld [vmem:[#allocation12 + $0x1b4] sm:$0xf0] }
 0x549   :  { %2297 = vmatpush.bf16.msrb.mxu0 %v3824_v17  ;;  %2284 = vmatpush.bf16.msra.mxu3 %v3696_v49  ;;  %v3744_v17 = vor.u32 %v4329_v12, %v3741_v14  ;;  %v4403_v12 = vld [vmem:[#allocation12 + $0x154] sm:$0xf0]  ;;  %v3947_v14 = vld [vmem:[#allocation12 + $0xb0] sm:$0xf]  ;;  %v4417_v61 = vld [vmem:[#allocation12 + $0x1c4] sm:$0xf0] }
 0x54a   :  { %2276 = vmatpush.bf16.msrb.mxu2 %v3740_v13  ;;  %2262 = vmatpush.bf16.msra.mxu1 %v3628_v18  ;;  %v3891_v18 = vld [vmem:[#allocation12 + $0x40] sm:$0xf]  ;;  %v3948_v21 = vor.u32 %v4383_v15, %v3947_v14  ;;  %v3995_v15 = vld [vmem:[#allocation12 + $0x110] sm:$0xf] }
 0x54c   :  { %2186 = vrot.lane.b32.xlu1 %v1861_v23, %s4670_s15  ;;  %v3883_v23 = vld [vmem:[#allocation12 + $0x30] sm:$0xf] }
 0x54d   :  { %2298 = vmatpush.bf16.msrb.mxu0 %v3808_v30  ;;  %2285 = vmatpush.bf16.msra.mxu3 %v3680_v45  ;;  %v1760_v30 = vpop.permute.xlu2 %1759  ;;  %v3915_v45 = vld [vmem:[#allocation12 + $0x70] sm:$0xf]  ;;  %v3884_v25 = vor.u32 %v4367_v24, %v3883_v23  ;;  %v4413_v23 = vld [vmem:[#allocation12 + $0x1a4] sm:$0xf0] }
 0x54e   :  { %2263 = vmatpush.bf16.msra.mxu1 %v3612_v27  ;;  %v1762_v34 = vsel %vm1633_vm3, %v1758_v31, %v1760_v30  ;;  %v4365_v27 = vld [vmem:[#allocation12 + $0x24] sm:$0xf0]  ;;  %v4363_v30 = vld [vmem:[#allocation12 + $0x14] sm:$0xf0] }
 0x54f   :  { %2194 = vrot.lane.b32.xlu2 %v1865_v39, %s4670_s15  ;;  %v3876_v28 = vor.u32 %v4365_v27, %v3875_v26  ;;  %v4019_v39 = vld [vmem:[#allocation12 + $0x140] sm:$0xf]  ;;  %v3965_v26 = vld [vmem:[#allocation12 + $0xd8] sm:$0xf0] }
 0x551   :  { %2299 = vmatpush.bf16.msrb.mxu0 %v3792_v40  ;;  %2286 = vmatpush.bf16.msra.mxu3 %v3664_v60  ;;  %v3980_v40 = vor.u32 %v4391_v37, %v3979_v36  ;;  %v3916_v60 = vor.u32 %v4375_v46, %v3915_v45  ;;  %v3859_v36 = vld [vmem:[#allocation12] sm:$0xf]  ;;  %v4361_v37 = vld [vmem:[#allocation12 + $0x4] sm:$0xf0]  ;;  %v4379_v45 = vld [vmem:[#allocation12 + $0x94] sm:$0xf0] }
 0x552   :  { %v3860_v53 = vor.u32 %v4361_v37, %v3859_v36  ;;  %v4091_v46 = vld [vmem:[#allocation12 + $0x1d0] sm:$0xf]  ;;  %v4411_v36 = vld [vmem:[#allocation12 + $0x194] sm:$0xf0] }
 0x555   :  { %2300 = vmatpush.bf16.msrb.mxu0 %v3776_v52  ;;  %2287 = vmatpush.bf16.msra.mxu3 %v3648_v9  ;;  %v4423_v52 = vld [vmem:[#allocation12 + $0x1f4] sm:$0xf0]  ;;  %v4036_v9 = vor.u32 %v4405_v2, %v4035_v1  ;;  %v3981_v1 = vld [vmem:[#allocation12 + $0xf8] sm:$0xf0] }
 0x556   :  { %v4108_v56 = vor.u32 %v4423_v52, %v4107_v47  ;;  %v3984_v2 = vor.u32 %v4390_v0, %v3981_v1 }
 0x559   :  { %2301 = vmatpush.bf16.msrb.mxu0 %v3760_v4  ;;  %2288 = vmatpush.bf16.msra.mxu3 %v3632_v22  ;;  %v3955_v4 = vld [vmem:[#allocation12 + $0xc0] sm:$0xf]  ;;  %v3892_v22 = vor.u32 %v4369_v20, %v3891_v18  ;;  %v4368_v18 = vld [vmem:[#allocation12 + $0x44] sm:$0xf]  ;;  %v3893_v20 = vld [vmem:[#allocation12 + $0x48] sm:$0xf0] }
 0x55a   :  { %v3956_v13 = vor.u32 %v4385_v5, %v3955_v4  ;;  %v4397_v4 = vld [vmem:[#allocation12 + $0x124] sm:$0xf0] }
 0x55d   :  { %2302 = vmatpush.bf16.msrb.mxu0 %v3744_v17  ;;  %2289 = vmatpush.bf16.msra.mxu3 %v3616_v29  ;;  %v4028_v17 = vor.u32 %v4403_v12, %v4027_v11  ;;  %v3867_v29 = vld [vmem:[#allocation12 + $0x10] sm:$0xf]  ;;  %v4388_v12 = vld [vmem:[#allocation12 + $0xe4] sm:$0xf] }
 0x55e   :  { %v3868_v31 = vor.u32 %v4363_v30, %v3867_v29  ;;  %v4393_v29 = vld [vmem:[#allocation12 + $0x104] sm:$0xf0] }
 0x5bd   :  { %v1787_v35 = vpop.f32.mrf.mxu0 }
 0x5be   :  { %v1788_v49 = vadd.f32 %v1787_v35, %v1762_v34  ;;  %v4099_v34 = vld [vmem:[#allocation12 + $0x1e0] sm:$0xf]  ;;  %v3940_v35 = vor.u32 %v4381_v33, %v3939_v32  ;;  %v3885_v32 = vld [vmem:[#allocation12 + $0x38] sm:$0xf0]  ;;  %v4406_v33 = vld [vmem:[#allocation12 + $0x174] sm:$0xf] }
 0x5c0   :  { %v1792_v38 = vmax.f32 %v1788_v49, 0.0  ;;  %v4421_v49 = vld [vmem:[#allocation12 + $0x1e4] sm:$0xf0] }
 0x5c2   :  { %v1859_v41 = vpack.c.bf16 %v1792_v38, %v1792_v38  ;;  %v4100_v38 = vor.u32 %v4421_v49, %v4099_v34  ;;  %v4059_v49 = vld [vmem:[#allocation12 + $0x190] sm:$0xf] }
 0x5c3   :  { %v1774_v44 = vpop.f32.mrf.mxu3 }
 0x5c4   :  { %v1775_v48 = vadd.f32 %v1774_v44, %v1761_v43  ;;  %2225 = vmatmul.bf16.vlgmr.msra.gmra.mxu2 %v1859_v41  ;;  %2251 = vmatmul.bf16.vlgmr.msra.gmra.mxu0 %v1859_v41  ;;  %v3920_v43 = vor.u32 %v4374_v19, %v3917_v42  ;;  %v3931_v44 = vld [vmem:[#allocation12 + $0x90] sm:$0xf]  ;;  %v3877_v19 = vld [vmem:[#allocation12 + $0x28] sm:$0xf0]  ;;  %v4404_v42 = vld [vmem:[#allocation12 + $0x164] sm:$0xf] }
 0x5c5   :  { %v1789_v54 = vpop.f32.mrf.mxu0  ;;  %2728 = vmatpush.bf16.msra.mxu2 %v3980_v40  ;;  %2754 = vmatpush.bf16.msra.mxu0 %v4108_v56  ;;  %v4401_v40 = vld [vmem:[#allocation12 + $0x144] sm:$0xf0]  ;;  %v3932_v47 = vor.u32 %v4379_v45, %v3931_v44  ;;  %v3909_v56 = vld [vmem:[#allocation12 + $0x68] sm:$0xf0]  ;;  %v4051_v45 = vld [vmem:[#allocation12 + $0x180] sm:$0xf] }
 0x5c6   :  { %v1791_v57 = vmax.f32 %v1775_v48, 0.0  ;;  %v4419_v48 = vld [vmem:[#allocation12 + $0x1d4] sm:$0xf0]  ;;  %v4012_v54 = vor.u32 %v4399_v51, %v4011_v50  ;;  %v4037_v44 = vld [vmem:[#allocation12 + $0x168] sm:$0xf0] }
 0x5c7   :  { %v4092_v52 = vor.u32 %v4419_v48, %v4091_v46  ;;  %v4409_v46 = vld [vmem:[#allocation12 + $0x184] sm:$0xf0]  ;;  %v4382_v50 = vld [vmem:[#allocation12 + $0xb4] sm:$0xf]  ;;  %v3949_v51 = vld [vmem:[#allocation12 + $0xb8] sm:$0xf0] }
 0x5c8   :  { %v1858_v63 = vpack.c.bf16 %v1791_v57, %v1791_v57  ;;  %v3923_v57 = vld [vmem:[#allocation12 + $0x80] sm:$0xf]  ;;  %v4052_v48 = vor.u32 %v4409_v46, %v4051_v45  ;;  %v2191_v45 = vpop.permute.xlu2 %2190  ;;  %v4392_v46 = vld [vmem:[#allocation12 + $0x104] sm:$0xf] }
 0x5c9   :  { %2729 = vmatpush.bf16.msra.mxu2 %v3972_v55  ;;  %2755 = vmatpush.bf16.msra.mxu0 %v4100_v38  ;;  %v4372_v55 = vld [vmem:[#allocation12 + $0x64] sm:$0xf]  ;;  %v4060_v38 = vor.u32 %v4411_v36, %v4059_v49  ;;  %v4414_v36 = vld [vmem:[#allocation12 + $0x1b4] sm:$0xf] }
 0x5ca   :  { %2212 = vmatmul.bf16.vlgmr.msrb.gmra.mxu1 %v1858_v63  ;;  %2238 = vmatmul.bf16.vlgmr.msrb.gmra.mxu3 %v1858_v63  ;;  %v3912_v58 = vor.u32 %v4372_v55, %v3909_v56  ;;  %v4109_v55 = vld [vmem:[#allocation12 + $0x1f8] sm:$0xf0] }
 0x5cb   :  { %v1776_v6 = vpop.f32.mrf.mxu3  ;;  %2715 = vmatpush.bf16.msrb.mxu1 %v3916_v60  ;;  %2741 = vmatpush.bf16.msrb.mxu3 %v4044_v62  ;;  %v4083_v60 = vld [vmem:[#allocation12 + $0x1c0] sm:$0xf]  ;;  %v3924_v62 = vor.u32 %v4377_v59, %v3923_v57  ;;  %v4362_v57 = vld [vmem:[#allocation12 + $0x14] sm:$0xf] }
 0x5cc   :  { %v4370_v6 = vld [vmem:[#allocation12 + $0x54] sm:$0xf] }
 0x5cd   :  { %2730 = vmatpush.bf16.msra.mxu2 %v3964_v3  ;;  %2756 = vmatpush.bf16.msra.mxu0 %v4092_v52  ;;  %v4003_v3 = vld [vmem:[#allocation12 + $0x120] sm:$0xf]  ;;  %v4422_v52 = vld [vmem:[#allocation12 + $0x1f4] sm:$0xf] }
 0x5ce   :  { %v4004_v5 = vor.u32 %v4397_v4, %v4003_v3  ;;  %v4112_v56 = vor.u32 %v4422_v52, %v4109_v55  ;;  %v4402_v59 = vld [vmem:[#allocation12 + $0x154] sm:$0xf]  ;;  %v4380_v3 = vld [vmem:[#allocation12 + $0xa4] sm:$0xf]  ;;  %v3941_v4 = vld [vmem:[#allocation12 + $0xa8] sm:$0xf0] }
 0x5cf   :  { %2716 = vmatpush.bf16.msrb.mxu1 %v3908_v7  ;;  %2742 = vmatpush.bf16.msrb.mxu3 %v4036_v9  ;;  %v3901_v7 = vld [vmem:[#allocation12 + $0x58] sm:$0xf0]  ;;  %v4075_v9 = vld [vmem:[#allocation12 + $0x1b0] sm:$0xf]  ;;  %v4410_v52 = vld [vmem:[#allocation12 + $0x194] sm:$0xf] }
 0x5d0   :  { %v3904_v8 = vor.u32 %v4370_v6, %v3901_v7  ;;  %v4076_v11 = vor.u32 %v4415_v10, %v4075_v9  ;;  %v4420_v6 = vld [vmem:[#allocation12 + $0x1e4] sm:$0xf]  ;;  %v4101_v7 = vld [vmem:[#allocation12 + $0x1e8] sm:$0xf0] }
 0x5d1   :  { %2731 = vmatpush.bf16.msra.mxu2 %v3956_v13  ;;  %v3973_v13 = vld [vmem:[#allocation12 + $0xe8] sm:$0xf0]  ;;  %v4360_v9 = vld [vmem:[#allocation12 + $0x4] sm:$0xf] }
 0x5d2   :  { %v3976_v14 = vor.u32 %v4388_v12, %v3973_v13  ;;  %v3861_v10 = vld [vmem:[#allocation12 + $0x8] sm:$0xf0] }
 0x5d3   :  { %2717 = vmatpush.bf16.msrb.mxu1 %v3900_v16  ;;  %2743 = vmatpush.bf16.msrb.mxu3 %v4028_v17  ;;  %v4395_v16 = vld [vmem:[#allocation12 + $0x114] sm:$0xf0]  ;;  %v3864_v12 = vor.u32 %v4360_v9, %v3861_v10  ;;  %v4021_v13 = vld [vmem:[#allocation12 + $0x148] sm:$0xf0] }
 0x5d4   :  { %2277 = vmatmul.bf16.vlgmr.msrb.gmra.mxu2 %v1859_v41  ;;  %2303 = vmatmul.bf16.vlgmr.msrb.gmra.mxu0 %v1859_v41  ;;  %v4020_v41 = vor.u32 %v4401_v40, %v4019_v39  ;;  %v3996_v17 = vor.u32 %v4395_v16, %v3995_v15  ;;  %v3957_v39 = vld [vmem:[#allocation12 + $0xc8] sm:$0xf0]  ;;  %v4378_v15 = vld [vmem:[#allocation12 + $0x94] sm:$0xf]  ;;  %v3933_v16 = vld [vmem:[#allocation12 + $0x98] sm:$0xf0] }
 0x5d5   :  { %2732 = vmatpush.bf16.msra.mxu2 %v3948_v21  ;;  %v3896_v21 = vor.u32 %v4368_v18, %v3893_v20  ;;  %v3936_v18 = vor.u32 %v4378_v15, %v3933_v16  ;;  %v4093_v20 = vld [vmem:[#allocation12 + $0x1d8] sm:$0xf0]  ;;  %v2195_v16 = vpop.permute.xlu2 %2194 }
 0x5d7   :  { %2718 = vmatpush.bf16.msrb.mxu1 %v3892_v22  ;;  %2744 = vmatpush.bf16.msrb.mxu3 %v4020_v41  ;;  %v4067_v22 = vld [vmem:[#allocation12 + $0x1a0] sm:$0xf]  ;;  %v4364_v41 = vld [vmem:[#allocation12 + $0x24] sm:$0xf] }
 0x5d8   :  { %v4068_v24 = vor.u32 %v4413_v23, %v4067_v22  ;;  %v4398_v22 = vld [vmem:[#allocation12 + $0x134] sm:$0xf]  ;;  %v4013_v23 = vld [vmem:[#allocation12 + $0x138] sm:$0xf0] }
 0x5d9   :  { %2733 = vmatpush.bf16.msra.mxu2 %v3940_v35  ;;  %v4045_v35 = vld [vmem:[#allocation12 + $0x178] sm:$0xf0] }
 0x5da   :  { %2264 = vmatmul.bf16.vlgmr.msra.gmra.mxu1 %v1858_v63  ;;  %2290 = vmatmul.bf16.vlgmr.msra.gmra.mxu3 %v1858_v63  ;;  %v4084_v63 = vor.u32 %v4417_v61, %v4083_v60  ;;  %v4048_v37 = vor.u32 %v4406_v33, %v4045_v35  ;;  %v4940_v60 = vpop.permute.xlu1 %2188  ;;  %v4396_v33 = vld [vmem:[#allocation12 + $0x124] sm:$0xf] }
 0x5db   :  { %2719 = vmatpush.bf16.msrb.mxu1 %v3884_v25  ;;  %2745 = vmatpush.bf16.msrb.mxu3 %v4012_v54  ;;  %v4386_v25 = vld [vmem:[#allocation12 + $0xd4] sm:$0xf]  ;;  %v3952_v54 = vor.u32 %v4382_v50, %v3949_v51  ;;  %v2197_v55 = vsel %vm1633_vm3, %v4940_v60, %v2191_v45 }
 0x5dc   :  { %2757 = vmatpush.bf16.msra.mxu0 %v4084_v63  ;;  %v3968_v27 = vor.u32 %v4386_v25, %v3965_v26  ;;  %v4942_v63 = vld [vmem:[#allocation13 + $0xf] sm:$0x7]  ;;  %v4376_v26 = vld [vmem:[#allocation12 + $0x84] sm:$0xf] }
 0x5dd   :  { %2734 = vmatpush.bf16.msra.mxu2 %v3932_v47  ;;  %v4040_v47 = vor.u32 %v4404_v42, %v4037_v44  ;;  %v2383_v1 = vperm.slane %v4942_v63, 1  ;;  %v2384_v10 = vperm.slane %v4942_v63, 2 }
 0x5df   :  { %2720 = vmatpush.bf16.msrb.mxu1 %v3876_v28  ;;  %2746 = vmatpush.bf16.msrb.mxu3 %v4004_v5  ;;  %v3987_v28 = vld [vmem:[#allocation12 + $0x100] sm:$0xf]  ;;  %v3944_v5 = vor.u32 %v4380_v3, %v3941_v4  ;;  %v4408_v3 = vld [vmem:[#allocation12 + $0x184] sm:$0xf]  ;;  %v4053_v4 = vld [vmem:[#allocation12 + $0x188] sm:$0xf0] }
 0x5e0   :  { %2758 = vmatpush.bf16.msra.mxu0 %v4076_v11  ;;  %v3988_v30 = vor.u32 %v4393_v29, %v3987_v28  ;;  %2707 = vrot.lane.b32.xlu1 %v2383_v1, %s4670_s15  ;;  %v4400_v11 = vld [vmem:[#allocation12 + $0x144] sm:$0xf] }
 0x5e1   :  { %2735 = vmatpush.bf16.msra.mxu2 %v3924_v62  ;;  %v4029_v62 = vld [vmem:[#allocation12 + $0x158] sm:$0xf0]  ;;  %v4416_v28 = vld [vmem:[#allocation12 + $0x1c4] sm:$0xf]  ;;  %2709 = vrot.lane.b32.xlu2 %v2384_v10, %s4670_s15 }
 0x5e2   :  { %v4032_v0 = vor.u32 %v4402_v59, %v4029_v62  ;;  %v2187_v29 = vpop.permute.xlu1 %2186 }
 0x5e3   :  { %2721 = vmatpush.bf16.msrb.mxu1 %v3868_v31  ;;  %2747 = vmatpush.bf16.msrb.mxu3 %v3996_v17  ;;  %v4366_v31 = vld [vmem:[#allocation12 + $0x34] sm:$0xf]  ;;  %v2196_v49 = vsel %vm1633_vm3, %v2187_v29, %v4940_v60 }
 0x5e4   :  { %2759 = vmatpush.bf16.msra.mxu0 %v4068_v24  ;;  %v3888_v34 = vor.u32 %v4366_v31, %v3885_v32  ;;  %v4418_v17 = vld [vmem:[#allocation12 + $0x1d4] sm:$0xf]  ;;  %v4016_v24 = vor.u32 %v4398_v22, %v4013_v23  ;;  %v4085_v31 = vld [vmem:[#allocation12 + $0x1c8] sm:$0xf0] }
 0x5e5   :  { %2780 = vmatpush.bf16.msrb.mxu2 %v3984_v2  ;;  %v2382_v2 = vperm.slane %v4942_v63, 0  ;;  %v4088_v32 = vor.u32 %v4416_v28, %v4085_v31 }
 0x5e7   :  { %2722 = vmatpush.bf16.msrb.mxu1 %v3860_v53  ;;  %2748 = vmatpush.bf16.msrb.mxu3 %v3988_v30  ;;  %v4384_v53 = vld [vmem:[#allocation12 + $0xc4] sm:$0xf] }
 0x5e8   :  { %v3960_v40 = vor.u32 %v4384_v53, %v3957_v39  ;;  %2760 = vmatpush.bf16.msra.mxu0 %v4060_v38  ;;  %2705 = vrot.lane.b32.xlu0 %v2382_v2, %s4670_s15  ;;  %v4394_v53 = vld [vmem:[#allocation12 + $0x114] sm:$0xf]  ;;  %v3997_v39 = vld [vmem:[#allocation12 + $0x118] sm:$0xf0] }
 0x5e9   :  { %2781 = vmatpush.bf16.msrb.mxu2 %v3976_v14  ;;  %v4024_v14 = vor.u32 %v4400_v11, %v4021_v13  ;;  %v4000_v42 = vor.u32 %v4394_v53, %v3997_v39 }
 0x5eb   :  { %2767 = vmatpush.bf16.msra.mxu1 %v3920_v43  ;;  %2793 = vmatpush.bf16.msra.mxu3 %v4048_v37  ;;  %v3880_v43 = vor.u32 %v4364_v41, %v3877_v19  ;;  %v4077_v37 = vld [vmem:[#allocation12 + $0x1b8] sm:$0xf0] }
 0x5ec   :  { %2761 = vmatpush.bf16.msra.mxu0 %v4052_v48  ;;  %v4080_v38 = vor.u32 %v4414_v36, %v4077_v37 }
 0x5ed   :  { %2782 = vmatpush.bf16.msrb.mxu2 %v3968_v27  ;;  %v3925_v27 = vld [vmem:[#allocation12 + $0x88] sm:$0xf0] }
 0x5ee   :  { %v3928_v30 = vor.u32 %v4376_v26, %v3925_v27 }
 0x5ef   :  { %2768 = vmatpush.bf16.msra.mxu1 %v3912_v58  ;;  %2794 = vmatpush.bf16.msra.mxu3 %v4040_v47  ;;  %v3869_v58 = vld [vmem:[#allocation12 + $0x18] sm:$0xf0]  ;;  %v3989_v47 = vld [vmem:[#allocation12 + $0x108] sm:$0xf0] }
 0x5f0   :  { %v3872_v61 = vor.u32 %v4362_v57, %v3869_v58  ;;  %2806 = vmatpush.bf16.msrb.mxu0 %v4112_v56  ;;  %v3992_v56 = vor.u32 %v4392_v46, %v3989_v47 }
 0x5f1   :  { %2783 = vmatpush.bf16.msrb.mxu2 %v3960_v40  ;;  %v4412_v40 = vld [vmem:[#allocation12 + $0x1a4] sm:$0xf] }
 0x5f3   :  { %2769 = vmatpush.bf16.msra.mxu1 %v3904_v8  ;;  %2795 = vmatpush.bf16.msra.mxu3 %v4032_v0  ;;  %v4104_v8 = vor.u32 %v4420_v6, %v4101_v7  ;;  %v4056_v6 = vor.u32 %v4408_v3, %v4053_v4 }
 0x5f5   :  { %2784 = vmatpush.bf16.msrb.mxu2 %v3952_v54  ;;  %2807 = vmatpush.bf16.msrb.mxu0 %v4104_v8  ;;  %v4061_v54 = vld [vmem:[#allocation12 + $0x198] sm:$0xf0]  ;;  %v2193_v8 = vpop.permute.xlu0 %2192 }
 0x5f6   :  { %v4064_v59 = vor.u32 %v4410_v52, %v4061_v54  ;;  %v2198_v11 = vsel %vm1633_vm3, %v2191_v45, %v2193_v8 }
 0x5f7   :  { %2770 = vmatpush.bf16.msra.mxu1 %v3896_v21  ;;  %2796 = vmatpush.bf16.msra.mxu3 %v4024_v14  ;;  %v4096_v21 = vor.u32 %v4418_v17, %v4093_v20  ;;  %v2199_v20 = vsel %vm1633_vm3, %v2193_v8, %v2195_v16 }
 0x5f9   :  { %2785 = vmatpush.bf16.msrb.mxu2 %v3944_v5  ;;  %2808 = vmatpush.bf16.msrb.mxu0 %v4096_v21 }
 0x5fb   :  { %2771 = vmatpush.bf16.msra.mxu1 %v3888_v34  ;;  %2797 = vmatpush.bf16.msra.mxu3 %v4016_v24  ;;  %v4005_v34 = vld [vmem:[#allocation12 + $0x128] sm:$0xf0] }
 0x5fc   :  { %v4008_v35 = vor.u32 %v4396_v33, %v4005_v34 }
 0x5fd   :  { %2786 = vmatpush.bf16.msrb.mxu2 %v3936_v18  ;;  %2809 = vmatpush.bf16.msrb.mxu0 %v4088_v32 }
 0x5ff   :  { %2772 = vmatpush.bf16.msra.mxu1 %v3880_v43  ;;  %2798 = vmatpush.bf16.msra.mxu3 %v4008_v35  ;;  %v4069_v43 = vld [vmem:[#allocation12 + $0x1a8] sm:$0xf0] }
 0x600   :  { %v4072_v50 = vor.u32 %v4412_v40, %v4069_v43 }
 0x601   :  { %2787 = vmatpush.bf16.msrb.mxu2 %v3928_v30  ;;  %2810 = vmatpush.bf16.msrb.mxu0 %v4080_v38 }
 0x603   :  { %2773 = vmatpush.bf16.msra.mxu1 %v3872_v61  ;;  %2799 = vmatpush.bf16.msra.mxu3 %v4000_v42 }
 0x605   :  { %2811 = vmatpush.bf16.msrb.mxu0 %v4072_v50 }
 0x607   :  { %2774 = vmatpush.bf16.msra.mxu1 %v3864_v12  ;;  %2800 = vmatpush.bf16.msra.mxu3 %v3992_v56 }
 0x609   :  { %2812 = vmatpush.bf16.msrb.mxu0 %v4064_v59 }
 0x60d   :  { %2813 = vmatpush.bf16.msrb.mxu0 %v4056_v6 }
 0x63b   :  { %v2710_v43 = vpop.permute.xlu2 %2709 }
 0x641   :  { %v2252_v25 = vpop.f32.mrf.mxu0 }
 0x647   :  { %v2213_v41 = vpop.f32.mrf.mxu1  ;;  %v2226_v19 = vpop.f32.mrf.mxu2 }
 0x648   :  { %v2214_v44 = vadd.f32 %v2213_v41, %v2196_v49 }
 0x649   :  { %v2254_v48 = vpop.f32.mrf.mxu0 }
 0x64a   :  { %v2227_v51 = vadd.f32 %v2226_v19, %v2214_v44 }
 0x64c   :  { %v2308_v57 = vmax.f32 %v2227_v51, 0.0 }
 0x64d   :  { %v2239_v58 = vpop.f32.mrf.mxu3 }
 0x64e   :  { %v2377_v61 = vpack.c.bf16 %v2308_v57, %v2308_v57  ;;  %v2240_v62 = vadd.f32 %v2239_v58, %v2197_v55 }
 0x64f   :  { %v2215_v0 = vpop.f32.mrf.mxu1  ;;  %v2228_v1 = vpop.f32.mrf.mxu2 }
 0x650   :  { %v2253_v2 = vadd.f32 %v2252_v25, %v2240_v62  ;;  %2723 = vmatmul.bf16.vlgmr.msrb.gmra.mxu1 %v2377_v61 }
 0x651   :  { %v2304_v5 = vpop.f32.mrf.mxu0 }
 0x652   :  { %v2309_v7 = vmax.f32 %v2253_v2, 0.0  ;;  %v2708_v32 = vpop.permute.xlu1 %2707 }
 0x653   :  { %v2712_v46 = vsel %vm1633_vm3, %v2708_v32, %v2710_v43 }
 0x654   :  { %v2378_v60 = vpack.c.bf16 %v2309_v7, %v2309_v7 }
 0x655   :  { %v2241_v9 = vpop.f32.mrf.mxu3 }
 0x656   :  { %2736 = vmatmul.bf16.vlgmr.msra.gmra.mxu2 %v2378_v60 }
 0x657   :  { %v2265_v12 = vpop.f32.mrf.mxu1  ;;  %v2278_v13 = vpop.f32.mrf.mxu2 }
 0x658   :  { %v2266_v14 = vadd.f32 %v2265_v12, %v2198_v11 }
 0x659   :  { %v2306_v15 = vpop.f32.mrf.mxu0 }
 0x65a   :  { %v2279_v17 = vadd.f32 %v2278_v13, %v2266_v14  ;;  %v2706_v33 = vpop.permute.xlu0 %2705 }
 0x65b   :  { %v2711_v34 = vsel %vm1633_vm3, %v2706_v33, %v2708_v32 }
 0x65c   :  { %v2310_v18 = vmax.f32 %v2279_v17, 0.0 }
 0x65d   :  { %v2291_v21 = vpop.f32.mrf.mxu3 }
 0x65e   :  { %v2379_v22 = vpack.c.bf16 %v2310_v18, %v2310_v18  ;;  %v2292_v23 = vadd.f32 %v2291_v21, %v2199_v20 }
 0x65f   :  { %v2267_v24 = vpop.f32.mrf.mxu1  ;;  %v2280_v25 = vpop.f32.mrf.mxu2 }
 0x660   :  { %v2305_v26 = vadd.f32 %v2304_v5, %v2292_v23  ;;  %2749 = vmatmul.bf16.vlgmr.msrb.gmra.mxu3 %v2379_v22  ;;  %2775 = vmatmul.bf16.vlgmr.msra.gmra.mxu1 %v2377_v61 }
 0x662   :  { %v2311_v63 = vmax.f32 %v2305_v26, 0.0 }
 0x664   :  { %v2380_v27 = vpack.c.bf16 %v2311_v63, %v2311_v63 }
 0x665   :  { %v2293_v28 = vpop.f32.mrf.mxu3 }
 0x666   :  { %2762 = vmatmul.bf16.vlgmr.msra.gmra.mxu0 %v2380_v27  ;;  %2788 = vmatmul.bf16.vlgmr.msrb.gmra.mxu2 %v2378_v60 }
 0x670   :  { %2801 = vmatmul.bf16.vlgmr.msra.gmra.mxu3 %v2379_v22 }
 0x676   :  { %2814 = vmatmul.bf16.vlgmr.msrb.gmra.mxu0 %v2380_v27 }
 0x6cd   :  { %v2724_v29 = vpop.f32.mrf.mxu1 }
 0x6ce   :  { %v2725_v49 = vadd.f32 %v2724_v29, %v2711_v34 }
 0x6d5   :  { %v2726_v30 = vpop.f32.mrf.mxu1 }
 0x6d9   :  { %v2737_v31 = vpop.f32.mrf.mxu2 }
 0x6da   :  { %v2738_v37 = vadd.f32 %v2737_v31, %v2725_v49 }
 0x6dd   :  { %v2776_v35 = vpop.f32.mrf.mxu1 }
 0x6de   :  { %v2777_v48 = vadd.f32 %v2776_v35, %v2712_v46 }
 0x6e1   :  { %v2739_v36 = vpop.f32.mrf.mxu2 }
 0x6e3   :  { %v2750_v38 = vpop.f32.mrf.mxu3  ;;  %v2763_v53 = vpop.f32.mrf.mxu0 }
 0x6e4   :  { %v2751_v39 = vadd.f32 %v2750_v38, %v2738_v37 }
 0x6e5   :  { %v2778_v40 = vpop.f32.mrf.mxu1 }
 0x6e6   :  { %v2764_v41 = vadd.f32 %v2763_v53, %v2751_v39 }
 0x6e8   :  { %v4113_v19 = vmul.f32 -1.442695, %v2764_v41 }
 0x6e9   :  { %v2789_v42 = vpop.f32.mrf.mxu2 }
 0x6ea   :  { %4444 = vpow2.f32 %v4113_v19  ;;  %v2790_v52 = vadd.f32 %v2789_v42, %v2777_v48 }
 0x6eb   :  { %v2752_v44 = vpop.f32.mrf.mxu3  ;;  %v2765_v45 = vpop.f32.mrf.mxu0 }
 0x6f0   :  { %v4445_v47 = vpop.eup %4444 }
 0x6f1   :  { %v2825_v50 = vadd.f32 1.0, %v4445_v47  ;;  %v2791_v51 = vpop.f32.mrf.mxu2 }
 0x6f3   :  { %4446 = vrcp.f32 %v2825_v50  ;;  %v2802_v54 = vpop.f32.mrf.mxu3  ;;  %v2815_v55 = vpop.f32.mrf.mxu0  ;;  %v2838_v2 = vand.u32 2147483648, %v2825_v50  ;;  %v2836_v4 = vand.u32 2147483647, %v2825_v50  ;;  %vm2832_vm5 = vweird.f32 %v2825_v50 }
 0x6f4   :  { %v2803_v56 = vadd.f32 %v2802_v54, %v2790_v52 }
 0x6f5   :  { %v2839_v7 = vor.u32 1.1754944e-38, %v2838_v2  ;;  %vm2837_vm7 = vcmp.eq.f32.partialorder %v2836_v4, 8.507059e+37 }
 0x6f6   :  { %v2816_v57 = vadd.f32 %v2815_v55, %v2803_v56 }
 0x6f8   :  { %v4114_v58 = vmul.f32 -1.442695, %v2816_v57 }
 0x6f9   :  { %v4447_v59 = vpop.eup %4446 }
 0x6fa   :  { %v2828_v61 = vmul.f32 %v4447_v59, %v2825_v50  ;;  %4448 = vpow2.f32 %v4114_v58  ;;  %vm2833_vm4 = vweird.f32 %v4447_v59 }
 0x6fb   :  { %v2804_v62 = vpop.f32.mrf.mxu3  ;;  %v2817_v0 = vpop.f32.mrf.mxu0  ;;  %vm2834_vm6 = vmor %vm2832_vm5, %vm2833_vm4 }
 0x6fc   :  { %v2829_v1 = vsub.f32 1.0, %v2828_v61 }
 0x6fe   :  { %v2830_v3 = vmul.f32 %v4447_v59, %v2829_v1 }
 0x700   :  { %v4449_v5 = vpop.eup %4448  ;;  %v2831_v6 = vadd.f32 %v4447_v59, %v2830_v3 }
 0x701   :  { %v2826_v60 = vadd.f32 1.0, %v4449_v5 }
 0x702   :  { %v2835_v8 = vsel %vm2834_vm6, %v4447_v59, %v2831_v6 }
 0x703   :  { %v2840_v9 = vsel %vm2837_vm7, %v2839_v7, %v2835_v8  ;;  %4450 = vrcp.f32 %v2826_v60  ;;  %v2853_v13 = vand.u32 2147483648, %v2826_v60  ;;  %v2851_v15 = vand.u32 2147483647, %v2826_v60 }
 0x704   :  { %2857 = vst [vmem:[%s4978_s14] sm:$0xff] %v2840_v9  ;;  %vm2847_vm9 = vweird.f32 %v2826_v60 }
 0x705   :  { %v2854_v17 = vor.u32 1.1754944e-38, %v2853_v13  ;;  %vm2852_vm11 = vcmp.eq.f32.partialorder %v2851_v15, 8.507059e+37 }
 0x709   :  { %v4451_v10 = vpop.eup %4450 }
 0x70a   :  { %v2843_v11 = vmul.f32 %v4451_v10, %v2826_v60  ;;  %vm2848_vm8 = vweird.f32 %v4451_v10 }
 0x70b   :  { %vm2849_vm10 = vmor %vm2847_vm9, %vm2848_vm8 }
 0x70c   :  { %v2844_v12 = vsub.f32 1.0, %v2843_v11 }
 0x70e   :  { %v2845_v14 = vmul.f32 %v4451_v10, %v2844_v12 }
 0x710   :  { %v2846_v16 = vadd.f32 %v4451_v10, %v2845_v14 }
 0x712   :  { %v2850_v18 = vsel %vm2849_vm10, %v4451_v10, %v2846_v16 }
 0x713   :  { %v2855_v20 = vsel %vm2852_vm11, %v2854_v17, %v2850_v18 }
 0x714   :  { %2858 = vst [vmem:[%s4978_s14 + $0x8] sm:$0xff] %v2855_v20 }
 0x715   :  { %2867 = vsyncpa [#allocation3], 1 }
 0x716   :  { %2868 = vsyncpa [#allocation5], 1 }
 0x717   :  { %2869 = vsyncpa [#allocation8], 1 }
 0x718   :  { %2870 = vsyncpa [#allocation11], 1 }
 0x719   :  { %2871 = vsyncpa [#allocation14], 1 }

</bundles_post_ra>
